<compile_context>
chip_gen: v5e
topology: v5e:2x2
jax: 0.10.0
libtpu: 0.0.40
codegen_flags: <defaults>
</compile_context>

<pallas_src>
import functools

import jax
import jax.numpy as jnp
import numpy as np
from jax.experimental import pallas as pl
from jax.experimental.pallas import tpu as pltpu


# ----------------------------------------------------------------------------
# Pallas kernel: conv(KxK, stride) + BN(scale,bias) [+ residual] [+ ReLU]
# ----------------------------------------------------------------------------
def _conv_bn_kernel(x_ref, w_ref, scale_ref, bias_ref, *rest,
                    K, stride, relu, has_res, TH, Wo, Wp):
    # x_ref:     stride==1: (1, 1, band_rows*Wp, Cin) flattened halo row band
    #            stride>1 : (1, 1, band_rows, Wp, Cin)
    # w_ref:     (K, K, Cin, Cout)
    # scale_ref: (1, Cout)  folded BN scale (f32)
    # bias_ref:  (1, Cout)  folded BN bias  (f32)
    # res_ref:   (1, TH*Wo, Cout)  optional residual
    # o_ref:     (1, TH*Wo, Cout)
    # acc_ref:   VMEM f32 scratch, (TH*Wp, Cout) for stride==1 else (TH*Wo, Cout)
    if has_res:
        res_ref, o_ref, acc_ref = rest
    else:
        res_ref = None
        o_ref, acc_ref = rest

    Cin = w_ref.shape[2]
    Cout = w_ref.shape[3]

    def accumulate(value, first):
        if first:
            acc_ref[...] = value
        else:
            acc_ref[...] += value

    if stride == 1:
        # One contiguous slab per row-shift dh (offset dh*Wp is even because
        # Wp is forced even, keeping bf16 sublane packing aligned). The column
        # shift dw is applied to the f32 matmul result instead of the packed
        # input. Accumulator columns w >= Wo receive wrapped ("garbage")
        # contributions and are dropped once below.
        slab_rows = TH * Wp + K - 1
        for dh in range(K):
            slab = x_ref[0, 0, pl.ds(dh * Wp, slab_rows), :]
            for dw in range(K):
                y = jnp.dot(slab, w_ref[dh, dw],
                            preferred_element_type=jnp.float32)
                y = jax.lax.slice(y, (dw, 0), (dw + TH * Wp, Cout))
                accumulate(y, dh == 0 and dw == 0)
    else:
        # TODO(synk): stride>1 path still uses strided in-kernel slices; a
        #             space-to-depth phase split in the wrapper would keep the
        #             hot loop fully contiguous.
        xb = x_ref[0, 0].astype(jnp.float32)  # (band_rows, Wp, Cin)
        for dh in range(K):
            for dw in range(K):
                patch = jax.lax.slice(
                    xb, (dh, dw, 0),
                    (dh + stride * (TH - 1) + 1,
                     dw + stride * (Wo - 1) + 1, Cin),
                    (stride, stride, 1))
                y = jnp.dot(patch.reshape(TH * Wo, Cin),
                            w_ref[dh, dw].astype(jnp.float32),
                            preferred_element_type=jnp.float32)
                accumulate(y, dh == 0 and dw == 0)

    acc = acc_ref[...]
    if stride == 1 and Wp != Wo:
        # Drop the wrapped (invalid) columns once per tile.
        acc = acc.reshape(TH, Wp, Cout)[:, :Wo, :].reshape(TH * Wo, Cout)

    out = acc * scale_ref[0] + bias_ref[0]            # folded BatchNorm (f32)
    if has_res:
        out = out + res_ref[0].astype(jnp.float32)    # residual add (f32)
    if relu:
        out = jnp.maximum(out, 0.0)
    o_ref[0] = out.astype(o_ref.dtype)


def _pick_tile_h(Ho, Wo, target):
    """Largest TH <= target dividing Ho with (TH*Wo) % 8 == 0, else full Ho."""
    for th in range(min(target, Ho), 0, -1):
        if Ho % th == 0 and (th * Wo) % 8 == 0:
            return th
    return Ho


def conv_bn(x_nhwc, w_hwio, scale, bias, residual=None, *, stride, relu,
            block_h=8, compute_dtype=jnp.bfloat16, out_dtype=None):
    """Fused conv + folded-BN (+ residual add) (+ ReLU) as one pallas_call."""
    N, H, W, Cin = x_nhwc.shape
    K = w_hwio.shape[0]
    Cout = w_hwio.shape[3]
    pad = (K - 1) // 2
    Ho = (H + 2 * pad - K) // stride + 1
    Wo = (W + 2 * pad - K) // stride + 1
    out_dtype = x_nhwc.dtype if out_dtype is None else out_dtype

    TH = _pick_tile_h(Ho, Wo, block_h)
    nt = Ho // TH

    # Padded width; keep it even so bf16-packed slab offsets (dh * Wp) stay
    # aligned to the sublane packing.
    Wp = W + 2 * pad
    pad_right = pad
    if stride == 1 and K > 1 and Wp % 2 == 1:
        pad_right += 1
        Wp += 1

    # Padded-input rows needed per output-row tile (+1 slack row for the
    # flat-window slabs of the stride==1 path).
    band_rows = (TH - 1) * stride + K
    if stride == 1 and K > 1:
        band_rows += 1

    needed_rows = (nt - 1) * TH * stride + band_rows
    extra_bottom = max(0, needed_rows - (H + 2 * pad))

    x_c = x_nhwc.astype(compute_dtype)
    x_pad = jnp.pad(x_c, ((0, 0), (pad, pad + extra_bottom),
                          (pad, pad_right), (0, 0)))
    # TODO(synk): the halo bands duplicate ~(K-1)/TH of the input in HBM; a
    #             manual halo DMA (memory_space=pl.ANY) would avoid that copy.
    bands = jnp.stack(
        [jax.lax.slice_in_dim(x_pad, t * TH * stride,
                              t * TH * stride + band_rows, axis=1)
         for t in range(nt)], axis=1)          # (N, nt, band_rows, Wp, Cin)

    if stride == 1:
        bands = bands.reshape(N, nt, band_rows * Wp, Cin)
        x_spec = pl.BlockSpec((1, 1, band_rows * Wp, Cin),
                              lambda n, t: (n, t, 0, 0))
        acc_rows = TH * Wp
    else:
        x_spec = pl.BlockSpec((1, 1, band_rows, Wp, Cin),
                              lambda n, t: (n, t, 0, 0, 0))
        acc_rows = TH * Wo

    w_c = w_hwio.astype(compute_dtype)
    scale2 = scale.reshape(1, Cout).astype(jnp.float32)
    bias2 = bias.reshape(1, Cout).astype(jnp.float32)

    in_specs = [
        x_spec,
        pl.BlockSpec((K, K, Cin, Cout), lambda n, t: (0, 0, 0, 0)),
        pl.BlockSpec((1, Cout), lambda n, t: (0, 0)),
        pl.BlockSpec((1, Cout), lambda n, t: (0, 0)),
    ]
    args = [bands, w_c, scale2, bias2]
    if residual is not None:
        in_specs.append(pl.BlockSpec((1, TH * Wo, Cout),
                                     lambda n, t: (n, t, 0)))
        args.append(residual.reshape(N, Ho * Wo, Cout))

    kernel = functools.partial(_conv_bn_kernel, K=K, stride=stride, relu=relu,
                               has_res=residual is not None,
                               TH=TH, Wo=Wo, Wp=Wp)

    out = pl.pallas_call(
        kernel,
        out_shape=jax.ShapeDtypeStruct((N, Ho * Wo, Cout), out_dtype),
        grid_spec=pltpu.PrefetchScalarGridSpec(
            num_scalar_prefetch=0,
            grid=(N, nt),
            in_specs=in_specs,
            out_specs=pl.BlockSpec((1, TH * Wo, Cout), lambda n, t: (n, t, 0)),
            scratch_shapes=[pltpu.VMEM((acc_rows, Cout), jnp.float32)],
        ),
        compiler_params=pltpu.CompilerParams(
            dimension_semantics=("parallel", "parallel"),
            vmem_limit_bytes=32 * 1024 * 1024),
    )(*args)
    return out.reshape(N, Ho, Wo, Cout)


# ----------------------------------------------------------------------------
# BasicBlock parameters + forward
# ----------------------------------------------------------------------------
def fold_bn(gamma, beta, mean, var, eps=1e-5):
    scale = gamma / jnp.sqrt(var + eps)
    bias = beta - mean * scale
    return scale, bias


def init_basic_block_params(key, in_channels, out_channels, stride):
    ks = jax.random.split(key, 8)
    p = {}
    p["w1"] = 0.1 * jax.random.normal(ks[0], (3, 3, in_channels, out_channels),
                                      jnp.float32)
    p["w2"] = 0.1 * jax.random.normal(ks[1], (3, 3, out_channels, out_channels),
                                      jnp.float32)
    # BN1 / BN2 (gamma, beta, running_mean, running_var)
    p["bn1"] = (1.0 + 0.05 * jax.random.normal(ks[2], (out_channels,)),
                0.05 * jax.random.normal(ks[3], (out_channels,)),
                0.05 * jax.random.normal(ks[4], (out_channels,)),
                1.0 + 0.1 * jnp.abs(jax.random.normal(ks[5], (out_channels,))))
    p["bn2"] = (1.0 + 0.05 * jax.random.normal(ks[6], (out_channels,)),
                0.05 * jax.random.normal(ks[7], (out_channels,)),
                jnp.zeros((out_channels,)),
                jnp.ones((out_channels,)))
    if stride != 1 or in_channels != out_channels:
        ks2 = jax.random.split(ks[0], 3)
        p["w_sc"] = 0.1 * jax.random.normal(ks2[0],
                                            (1, 1, in_channels, out_channels),
                                            jnp.float32)
        p["bn_sc"] = (jnp.ones((out_channels,)),
                      jnp.zeros((out_channels,)),
                      0.05 * jax.random.normal(ks2[1], (out_channels,)),
                      1.0 + 0.1 * jnp.abs(jax.random.normal(ks2[2],
                                                            (out_channels,))))
    return p


def basic_block_forward(x_nchw, params, *, in_channels, out_channels, stride,
                        compute_dtype=jnp.bfloat16):
    # NCHW (PyTorch interface) -> NHWC (kernel layout)
    x = jnp.transpose(x_nchw, (0, 2, 3, 1))
    act_dtype = x.dtype

    s1, b1 = fold_bn(*params["bn1"])
    s2, b2 = fold_bn(*params["bn2"])

    # conv1 + bn1 + relu (no residual); intermediate stored in compute_dtype.
    h1 = conv_bn(x, params["w1"], s1, b1, None, stride=stride, relu=True,
                 compute_dtype=compute_dtype, out_dtype=compute_dtype)

    # shortcut (kept in f32 for the residual add)
    if stride != 1 or in_channels != out_channels:
        ssc, bsc = fold_bn(*params["bn_sc"])
        sc = conv_bn(x, params["w_sc"], ssc, bsc, None, stride=stride,
                     relu=False, compute_dtype=compute_dtype,
                     out_dtype=jnp.float32)
    else:
        sc = x.astype(jnp.float32)

    # conv2 + bn2 + residual add + relu (fully fused)
    out = conv_bn(h1, params["w2"], s2, b2, sc, stride=1, relu=True,
                  compute_dtype=compute_dtype, out_dtype=act_dtype)

    # NHWC -> NCHW
    return jnp.transpose(out, (0, 3, 1, 2))


# ----------------------------------------------------------------------------
# Pure-JAX reference (same folded-BN semantics) for verification
# ----------------------------------------------------------------------------
def _ref_conv(x, w, stride, pad, compute_dtype):
    return jax.lax.conv_general_dilated(
        x.astype(compute_dtype), w.astype(compute_dtype), (stride, stride),
        [(pad, pad), (pad, pad)],
        dimension_numbers=("NHWC", "HWIO", "NHWC"),
        preferred_element_type=jnp.float32)


def basic_block_reference(x_nchw, params, *, in_channels, out_channels, stride,
                          compute_dtype=jnp.bfloat16):
    x = jnp.transpose(x_nchw, (0, 2, 3, 1))
    s1, b1 = fold_bn(*params["bn1"])
    s2, b2 = fold_bn(*params["bn2"])
    h1 = jnp.maximum(
        _ref_conv(x, params["w1"], stride, 1, compute_dtype) * s1 + b1, 0.0)
    h2 = _ref_conv(h1, params["w2"], 1, 1, compute_dtype) * s2 + b2
    if stride != 1 or in_channels != out_channels:
        ssc, bsc = fold_bn(*params["bn_sc"])
        sc = _ref_conv(x, params["w_sc"], stride, 0, compute_dtype) * ssc + bsc
    else:
        sc = x
    out = jnp.maximum(h2 + sc, 0.0)
    return jnp.transpose(out, (0, 3, 1, 2))


# ----------------------------------------------------------------------------
if __name__ == "__main__":
    in_channels, out_channels, stride = 4, 8, 1
    N, H, W = 2, 16, 16

    key = jax.random.PRNGKey(0)
    k_x, k_p = jax.random.split(key)
    x = jax.random.normal(k_x, (N, in_channels, H, W), jnp.float32)  # NCHW
    params = init_basic_block_params(k_p, in_channels, out_channels, stride)

    # f32 compute path: matches the PyTorch module's semantics tightly.
    out_f32 = basic_block_forward(x, params, in_channels=in_channels,
                                  out_channels=out_channels, stride=stride,
                                  compute_dtype=jnp.float32)
    out_f32 = jax.block_until_ready(out_f32)
    ref_f32 = basic_block_reference(x, params, in_channels=in_channels,
                                    out_channels=out_channels, stride=stride,
                                    compute_dtype=jnp.float32)
    assert out_f32.shape == (N, out_channels, H // stride, W // stride)
    np.testing.assert_allclose(np.asarray(out_f32), np.asarray(ref_f32),
                               rtol=1e-4, atol=1e-4)

    # bf16 compute path (default; recommended on v6e/v7x): bf16 MXU operands,
    # f32 accumulation / BN / residual / ReLU.
    out_bf16 = basic_block_forward(x, params, in_channels=in_channels,
                                   out_channels=out_channels, stride=stride,
                                   compute_dtype=jnp.bfloat16)
    out_bf16 = jax.block_until_ready(out_bf16)
    ref_bf16 = basic_block_reference(x, params, in_channels=in_channels,
                                     out_channels=out_channels, stride=stride,
                                     compute_dtype=jnp.bfloat16)
    np.testing.assert_allclose(np.asarray(out_bf16), np.asarray(ref_bf16),
                               rtol=2e-2, atol=2e-2)

    print("KERNEL_OK")
</pallas_src>

<mosaic_0001>
module attributes {stable_mosaic.version = 11 : i64} {
  func.func @_conv_bn_kernel(%arg0: i32, %arg1: i32, %arg2: memref<1x1x198x4xf32, #tpu.memory_space<vmem>>, %arg3: memref<3x3x4x8xf32, #tpu.memory_space<vmem>>, %arg4: memref<1x8xf32, #tpu.memory_space<vmem>>, %arg5: memref<1x8xf32, #tpu.memory_space<vmem>>, %arg6: memref<1x128x8xf32, #tpu.memory_space<vmem>>, %arg7: memref<144x8xf32, #tpu.memory_space<vmem>>) attributes {dimension_semantics = [#tpu.dimension_semantics<parallel>, #tpu.dimension_semantics<parallel>], iteration_bounds = array<i64: 2, 2>, scalar_prefetch = 0 : i64, scratch_operands = 1 : i64, tpu.core_type = #tpu.core_type<tc>, window_params = [{transform_indices = @transform_0, window_bounds = array<i64: 1, 1, 198, 4>}, {pipeline_mode = #tpu.pipeline_mode<synchronous>, transform_indices = @transform_1, window_bounds = array<i64: 3, 3, 4, 8>}, {pipeline_mode = #tpu.pipeline_mode<synchronous>, transform_indices = @transform_2, window_bounds = array<i64: 1, 8>}, {pipeline_mode = #tpu.pipeline_mode<synchronous>, transform_indices = @transform_3, window_bounds = array<i64: 1, 8>}, {transform_indices = @transform_4, window_bounds = array<i64: 1, 128, 8>}]} {
    %c0 = arith.constant 0 : index
    %c0_0 = arith.constant 0 : index
    %c0_1 = arith.constant 0 : index
    %c0_2 = arith.constant 0 : index
    %0 = vector.load %arg2[%c0, %c0_0, %c0_1, %c0_2] : memref<1x1x198x4xf32, #tpu.memory_space<vmem>>, vector<1x1x146x4xf32>
    %1 = vector.shape_cast %0 : vector<1x1x146x4xf32> to vector<146x4xf32>
    %c0_3 = arith.constant 0 : index
    %c0_4 = arith.constant 0 : index
    %c0_5 = arith.constant 0 : index
    %c0_6 = arith.constant 0 : index
    %2 = vector.load %arg3[%c0_3, %c0_4, %c0_5, %c0_6] : memref<3x3x4x8xf32, #tpu.memory_space<vmem>>, vector<1x1x4x8xf32>
    %3 = vector.shape_cast %2 : vector<1x1x4x8xf32> to vector<4x8xf32>
    %cst = arith.constant dense<0.000000e+00> : vector<146x8xf32>
    %4 = tpu.matmul %1, %3, %cst {dimension_numbers = #tpu.dot_dimension_numbers<[1], [0], [0], [1], [0, 0, 1, 1], [], []>} : vector<146x4xf32>, vector<4x8xf32>, vector<146x8xf32> -> vector<146x8xf32>
    %5 = vector.extract_strided_slice %4 {offsets = [0, 0], sizes = [144, 8], strides = [1, 1]} : vector<146x8xf32> to vector<144x8xf32>
    %c0_7 = arith.constant 0 : index
    %c0_8 = arith.constant 0 : index
    %6 = vector.load %arg7[%c0_7, %c0_8] : memref<144x8xf32, #tpu.memory_space<vmem>>, vector<144x8xf32>
    tpu.vector_store %arg7[%c0_7, %c0_8], %5 {strides = array<i32>} : memref<144x8xf32, #tpu.memory_space<vmem>>, vector<144x8xf32>,
    %c0_9 = arith.constant 0 : index
    %c1 = arith.constant 1 : index
    %c0_10 = arith.constant 0 : index
    %c0_11 = arith.constant 0 : index
    %7 = vector.load %arg3[%c0_9, %c1, %c0_10, %c0_11] : memref<3x3x4x8xf32, #tpu.memory_space<vmem>>, vector<1x1x4x8xf32>
    %8 = vector.shape_cast %7 : vector<1x1x4x8xf32> to vector<4x8xf32>
    %cst_12 = arith.constant dense<0.000000e+00> : vector<146x8xf32>
    %9 = tpu.matmul %1, %8, %cst_12 {dimension_numbers = #tpu.dot_dimension_numbers<[1], [0], [0], [1], [0, 0, 1, 1], [], []>} : vector<146x4xf32>, vector<4x8xf32>, vector<146x8xf32> -> vector<146x8xf32>
    %10 = vector.extract_strided_slice %9 {offsets = [1, 0], sizes = [144, 8], strides = [1, 1]} : vector<146x8xf32> to vector<144x8xf32>
    %c0_13 = arith.constant 0 : index
    %c0_14 = arith.constant 0 : index
    %11 = vector.load %arg7[%c0_13, %c0_14] : memref<144x8xf32, #tpu.memory_space<vmem>>, vector<144x8xf32>
    %12 = arith.addf %11, %10 : vector<144x8xf32>
    %c0_15 = arith.constant 0 : index
    %c0_16 = arith.constant 0 : index
    %13 = vector.load %arg7[%c0_15, %c0_16] : memref<144x8xf32, #tpu.memory_space<vmem>>, vector<144x8xf32>
    tpu.vector_store %arg7[%c0_15, %c0_16], %12 {strides = array<i32>} : memref<144x8xf32, #tpu.memory_space<vmem>>, vector<144x8xf32>,
    %c0_17 = arith.constant 0 : index
    %c2 = arith.constant 2 : index
    %c0_18 = arith.constant 0 : index
    %c0_19 = arith.constant 0 : index
    %14 = vector.load %arg3[%c0_17, %c2, %c0_18, %c0_19] : memref<3x3x4x8xf32, #tpu.memory_space<vmem>>, vector<1x1x4x8xf32>
    %15 = vector.shape_cast %14 : vector<1x1x4x8xf32> to vector<4x8xf32>
    %cst_20 = arith.constant dense<0.000000e+00> : vector<146x8xf32>
    %16 = tpu.matmul %1, %15, %cst_20 {dimension_numbers = #tpu.dot_dimension_numbers<[1], [0], [0], [1], [0, 0, 1, 1], [], []>} : vector<146x4xf32>, vector<4x8xf32>, vector<146x8xf32> -> vector<146x8xf32>
    %17 = vector.extract_strided_slice %16 {offsets = [2, 0], sizes = [144, 8], strides = [1, 1]} : vector<146x8xf32> to vector<144x8xf32>
    %c0_21 = arith.constant 0 : index
    %c0_22 = arith.constant 0 : index
    %18 = vector.load %arg7[%c0_21, %c0_22] : memref<144x8xf32, #tpu.memory_space<vmem>>, vector<144x8xf32>
    %19 = arith.addf %18, %17 : vector<144x8xf32>
    %c0_23 = arith.constant 0 : index
    %c0_24 = arith.constant 0 : index
    %20 = vector.load %arg7[%c0_23, %c0_24] : memref<144x8xf32, #tpu.memory_space<vmem>>, vector<144x8xf32>
    tpu.vector_store %arg7[%c0_23, %c0_24], %19 {strides = array<i32>} : memref<144x8xf32, #tpu.memory_space<vmem>>, vector<144x8xf32>,
    %c0_25 = arith.constant 0 : index
    %c0_26 = arith.constant 0 : index
    %c18 = arith.constant 18 : index
    %c0_27 = arith.constant 0 : index
    %21 = vector.load %arg2[%c0_25, %c0_26, %c18, %c0_27] : memref<1x1x198x4xf32, #tpu.memory_space<vmem>>, vector<1x1x146x4xf32>
    %22 = vector.shape_cast %21 : vector<1x1x146x4xf32> to vector<146x4xf32>
    %c1_28 = arith.constant 1 : index
    %c0_29 = arith.constant 0 : index
    %c0_30 = arith.constant 0 : index
    %c0_31 = arith.constant 0 : index
    %23 = vector.load %arg3[%c1_28, %c0_29, %c0_30, %c0_31] : memref<3x3x4x8xf32, #tpu.memory_space<vmem>>, vector<1x1x4x8xf32>
    %24 = vector.shape_cast %23 : vector<1x1x4x8xf32> to vector<4x8xf32>
    %cst_32 = arith.constant dense<0.000000e+00> : vector<146x8xf32>
    %25 = tpu.matmul %22, %24, %cst_32 {dimension_numbers = #tpu.dot_dimension_numbers<[1], [0], [0], [1], [0, 0, 1, 1], [], []>} : vector<146x4xf32>, vector<4x8xf32>, vector<146x8xf32> -> vector<146x8xf32>
    %26 = vector.extract_strided_slice %25 {offsets = [0, 0], sizes = [144, 8], strides = [1, 1]} : vector<146x8xf32> to vector<144x8xf32>
    %c0_33 = arith.constant 0 : index
    %c0_34 = arith.constant 0 : index
    %27 = vector.load %arg7[%c0_33, %c0_34] : memref<144x8xf32, #tpu.memory_space<vmem>>, vector<144x8xf32>
    %28 = arith.addf %27, %26 : vector<144x8xf32>
    %c0_35 = arith.constant 0 : index
    %c0_36 = arith.constant 0 : index
    %29 = vector.load %arg7[%c0_35, %c0_36] : memref<144x8xf32, #tpu.memory_space<vmem>>, vector<144x8xf32>
    tpu.vector_store %arg7[%c0_35, %c0_36], %28 {strides = array<i32>} : memref<144x8xf32, #tpu.memory_space<vmem>>, vector<144x8xf32>,
    %c1_37 = arith.constant 1 : index
    %c1_38 = arith.constant 1 : index
    %c0_39 = arith.constant 0 : index
    %c0_40 = arith.constant 0 : index
    %30 = vector.load %arg3[%c1_37, %c1_38, %c0_39, %c0_40] : memref<3x3x4x8xf32, #tpu.memory_space<vmem>>, vector<1x1x4x8xf32>
    %31 = vector.shape_cast %30 : vector<1x1x4x8xf32> to vector<4x8xf32>
    %cst_41 = arith.constant dense<0.000000e+00> : vector<146x8xf32>
    %32 = tpu.matmul %22, %31, %cst_41 {dimension_numbers = #tpu.dot_dimension_numbers<[1], [0], [0], [1], [0, 0, 1, 1], [], []>} : vector<146x4xf32>, vector<4x8xf32>, vector<146x8xf32> -> vector<146x8xf32>
    %33 = vector.extract_strided_slice %32 {offsets = [1, 0], sizes = [144, 8], strides = [1, 1]} : vector<146x8xf32> to vector<144x8xf32>
    %c0_42 = arith.constant 0 : index
    %c0_43 = arith.constant 0 : index
    %34 = vector.load %arg7[%c0_42, %c0_43] : memref<144x8xf32, #tpu.memory_space<vmem>>, vector<144x8xf32>
    %35 = arith.addf %34, %33 : vector<144x8xf32>
    %c0_44 = arith.constant 0 : index
    %c0_45 = arith.constant 0 : index
    %36 = vector.load %arg7[%c0_44, %c0_45] : memref<144x8xf32, #tpu.memory_space<vmem>>, vector<144x8xf32>
    tpu.vector_store %arg7[%c0_44, %c0_45], %35 {strides = array<i32>} : memref<144x8xf32, #tpu.memory_space<vmem>>, vector<144x8xf32>,
    %c1_46 = arith.constant 1 : index
    %c2_47 = arith.constant 2 : index
    %c0_48 = arith.constant 0 : index
    %c0_49 = arith.constant 0 : index
    %37 = vector.load %arg3[%c1_46, %c2_47, %c0_48, %c0_49] : memref<3x3x4x8xf32, #tpu.memory_space<vmem>>, vector<1x1x4x8xf32>
    %38 = vector.shape_cast %37 : vector<1x1x4x8xf32> to vector<4x8xf32>
    %cst_50 = arith.constant dense<0.000000e+00> : vector<146x8xf32>
    %39 = tpu.matmul %22, %38, %cst_50 {dimension_numbers = #tpu.dot_dimension_numbers<[1], [0], [0], [1], [0, 0, 1, 1], [], []>} : vector<146x4xf32>, vector<4x8xf32>, vector<146x8xf32> -> vector<146x8xf32>
    %40 = vector.extract_strided_slice %39 {offsets = [2, 0], sizes = [144, 8], strides = [1, 1]} : vector<146x8xf32> to vector<144x8xf32>
    %c0_51 = arith.constant 0 : index
    %c0_52 = arith.constant 0 : index
    %41 = vector.load %arg7[%c0_51, %c0_52] : memref<144x8xf32, #tpu.memory_space<vmem>>, vector<144x8xf32>
    %42 = arith.addf %41, %40 : vector<144x8xf32>
    %c0_53 = arith.constant 0 : index
    %c0_54 = arith.constant 0 : index
    %43 = vector.load %arg7[%c0_53, %c0_54] : memref<144x8xf32, #tpu.memory_space<vmem>>, vector<144x8xf32>
    tpu.vector_store %arg7[%c0_53, %c0_54], %42 {strides = array<i32>} : memref<144x8xf32, #tpu.memory_space<vmem>>, vector<144x8xf32>,
    %c0_55 = arith.constant 0 : index
    %c0_56 = arith.constant 0 : index
    %c36 = arith.constant 36 : index
    %c0_57 = arith.constant 0 : index
    %44 = vector.load %arg2[%c0_55, %c0_56, %c36, %c0_57] : memref<1x1x198x4xf32, #tpu.memory_space<vmem>>, vector<1x1x146x4xf32>
    %45 = vector.shape_cast %44 : vector<1x1x146x4xf32> to vector<146x4xf32>
    %c2_58 = arith.constant 2 : index
    %c0_59 = arith.constant 0 : index
    %c0_60 = arith.constant 0 : index
    %c0_61 = arith.constant 0 : index
    %46 = vector.load %arg3[%c2_58, %c0_59, %c0_60, %c0_61] : memref<3x3x4x8xf32, #tpu.memory_space<vmem>>, vector<1x1x4x8xf32>
    %47 = vector.shape_cast %46 : vector<1x1x4x8xf32> to vector<4x8xf32>
    %cst_62 = arith.constant dense<0.000000e+00> : vector<146x8xf32>
    %48 = tpu.matmul %45, %47, %cst_62 {dimension_numbers = #tpu.dot_dimension_numbers<[1], [0], [0], [1], [0, 0, 1, 1], [], []>} : vector<146x4xf32>, vector<4x8xf32>, vector<146x8xf32> -> vector<146x8xf32>
    %49 = vector.extract_strided_slice %48 {offsets = [0, 0], sizes = [144, 8], strides = [1, 1]} : vector<146x8xf32> to vector<144x8xf32>
    %c0_63 = arith.constant 0 : index
    %c0_64 = arith.constant 0 : index
    %50 = vector.load %arg7[%c0_63, %c0_64] : memref<144x8xf32, #tpu.memory_space<vmem>>, vector<144x8xf32>
    %51 = arith.addf %50, %49 : vector<144x8xf32>
    %c0_65 = arith.constant 0 : index
    %c0_66 = arith.constant 0 : index
    %52 = vector.load %arg7[%c0_65, %c0_66] : memref<144x8xf32, #tpu.memory_space<vmem>>, vector<144x8xf32>
    tpu.vector_store %arg7[%c0_65, %c0_66], %51 {strides = array<i32>} : memref<144x8xf32, #tpu.memory_space<vmem>>, vector<144x8xf32>,
    %c2_67 = arith.constant 2 : index
    %c1_68 = arith.constant 1 : index
    %c0_69 = arith.constant 0 : index
    %c0_70 = arith.constant 0 : index
    %53 = vector.load %arg3[%c2_67, %c1_68, %c0_69, %c0_70] : memref<3x3x4x8xf32, #tpu.memory_space<vmem>>, vector<1x1x4x8xf32>
    %54 = vector.shape_cast %53 : vector<1x1x4x8xf32> to vector<4x8xf32>
    %cst_71 = arith.constant dense<0.000000e+00> : vector<146x8xf32>
    %55 = tpu.matmul %45, %54, %cst_71 {dimension_numbers = #tpu.dot_dimension_numbers<[1], [0], [0], [1], [0, 0, 1, 1], [], []>} : vector<146x4xf32>, vector<4x8xf32>, vector<146x8xf32> -> vector<146x8xf32>
    %56 = vector.extract_strided_slice %55 {offsets = [1, 0], sizes = [144, 8], strides = [1, 1]} : vector<146x8xf32> to vector<144x8xf32>
    %c0_72 = arith.constant 0 : index
    %c0_73 = arith.constant 0 : index
    %57 = vector.load %arg7[%c0_72, %c0_73] : memref<144x8xf32, #tpu.memory_space<vmem>>, vector<144x8xf32>
    %58 = arith.addf %57, %56 : vector<144x8xf32>
    %c0_74 = arith.constant 0 : index
    %c0_75 = arith.constant 0 : index
    %59 = vector.load %arg7[%c0_74, %c0_75] : memref<144x8xf32, #tpu.memory_space<vmem>>, vector<144x8xf32>
    tpu.vector_store %arg7[%c0_74, %c0_75], %58 {strides = array<i32>} : memref<144x8xf32, #tpu.memory_space<vmem>>, vector<144x8xf32>,
    %c2_76 = arith.constant 2 : index
    %c2_77 = arith.constant 2 : index
    %c0_78 = arith.constant 0 : index
    %c0_79 = arith.constant 0 : index
    %60 = vector.load %arg3[%c2_76, %c2_77, %c0_78, %c0_79] : memref<3x3x4x8xf32, #tpu.memory_space<vmem>>, vector<1x1x4x8xf32>
    %61 = vector.shape_cast %60 : vector<1x1x4x8xf32> to vector<4x8xf32>
    %cst_80 = arith.constant dense<0.000000e+00> : vector<146x8xf32>
    %62 = tpu.matmul %45, %61, %cst_80 {dimension_numbers = #tpu.dot_dimension_numbers<[1], [0], [0], [1], [0, 0, 1, 1], [], []>} : vector<146x4xf32>, vector<4x8xf32>, vector<146x8xf32> -> vector<146x8xf32>
    %63 = vector.extract_strided_slice %62 {offsets = [2, 0], sizes = [144, 8], strides = [1, 1]} : vector<146x8xf32> to vector<144x8xf32>
    %c0_81 = arith.constant 0 : index
    %c0_82 = arith.constant 0 : index
    %64 = vector.load %arg7[%c0_81, %c0_82] : memref<144x8xf32, #tpu.memory_space<vmem>>, vector<144x8xf32>
    %65 = arith.addf %64, %63 : vector<144x8xf32>
    %c0_83 = arith.constant 0 : index
    %c0_84 = arith.constant 0 : index
    %66 = vector.load %arg7[%c0_83, %c0_84] : memref<144x8xf32, #tpu.memory_space<vmem>>, vector<144x8xf32>
    tpu.vector_store %arg7[%c0_83, %c0_84], %65 {strides = array<i32>} : memref<144x8xf32, #tpu.memory_space<vmem>>, vector<144x8xf32>,
    %c0_85 = arith.constant 0 : index
    %c0_86 = arith.constant 0 : index
    %67 = vector.load %arg7[%c0_85, %c0_86] : memref<144x8xf32, #tpu.memory_space<vmem>>, vector<144x8xf32>
    %68 = vector.shape_cast %67 : vector<144x8xf32> to vector<8x18x8xf32>
    %69 = vector.extract_strided_slice %68 {offsets = [0, 0, 0], sizes = [8, 16, 8], strides = [1, 1, 1]} : vector<8x18x8xf32> to vector<8x16x8xf32>
    %70 = vector.shape_cast %69 : vector<8x16x8xf32> to vector<128x8xf32>
    %c0_87 = arith.constant 0 : index
    %c0_88 = arith.constant 0 : index
    %71 = vector.load %arg4[%c0_87, %c0_88] : memref<1x8xf32, #tpu.memory_space<vmem>>, vector<1x8xf32>
    %72 = vector.shape_cast %71 : vector<1x8xf32> to vector<8xf32>
    %73 = vector.shape_cast %72 : vector<8xf32> to vector<1x8xf32>
    %74 = vector.broadcast %73 : vector<1x8xf32> to vector<128x8xf32>
    %75 = arith.mulf %70, %74 : vector<128x8xf32>
    %c0_89 = arith.constant 0 : index
    %c0_90 = arith.constant 0 : index
    %76 = vector.load %arg5[%c0_89, %c0_90] : memref<1x8xf32, #tpu.memory_space<vmem>>, vector<1x8xf32>
    %77 = vector.shape_cast %76 : vector<1x8xf32> to vector<8xf32>
    %78 = vector.shape_cast %77 : vector<8xf32> to vector<1x8xf32>
    %79 = vector.broadcast %78 : vector<1x8xf32> to vector<128x8xf32>
    %80 = arith.addf %75, %79 : vector<128x8xf32>
    %cst_91 = arith.constant 0.000000e+00 : f32
    %81 = vector.broadcast %cst_91 : f32 to vector<128x8xf32>
    %82 = arith.maximumf %80, %81 : vector<128x8xf32>
    %c0_92 = arith.constant 0 : index
    %c0_93 = arith.constant 0 : index
    %c0_94 = arith.constant 0 : index
    %83 = vector.load %arg6[%c0_92, %c0_93, %c0_94] : memref<1x128x8xf32, #tpu.memory_space<vmem>>, vector<1x128x8xf32>
    %84 = vector.shape_cast %83 : vector<1x128x8xf32> to vector<128x8xf32>
    %85 = vector.shape_cast %82 : vector<128x8xf32> to vector<1x128x8xf32>
    tpu.vector_store %arg6[%c0_92, %c0_93, %c0_94], %85 {strides = array<i32>} : memref<1x128x8xf32, #tpu.memory_space<vmem>>, vector<1x128x8xf32>,
    return
  }
  func.func @transform_0(%arg0: i32, %arg1: i32) -> (i32, i32, i32, i32) {
    %c0_i32 = arith.constant 0 : i32
    %c0_i32_0 = arith.constant 0 : i32
    %c0_i32_1 = arith.constant 0 : i32
    return %arg0, %arg1, %c0_i32, %c0_i32_0 : i32, i32, i32, i32
  }
  func.func @transform_1(%arg0: i32, %arg1: i32) -> (i32, i32, i32, i32) {
    %c0_i32 = arith.constant 0 : i32
    %c0_i32_0 = arith.constant 0 : i32
    %c0_i32_1 = arith.constant 0 : i32
    %c0_i32_2 = arith.constant 0 : i32
    %c0_i32_3 = arith.constant 0 : i32
    return %c0_i32, %c0_i32_0, %c0_i32_1, %c0_i32_2 : i32, i32, i32, i32
  }
  func.func @transform_2(%arg0: i32, %arg1: i32) -> (i32, i32) {
    %c0_i32 = arith.constant 0 : i32
    %c0_i32_0 = arith.constant 0 : i32
    %c0_i32_1 = arith.constant 0 : i32
    return %c0_i32, %c0_i32_0 : i32, i32
  }
  func.func @transform_3(%arg0: i32, %arg1: i32) -> (i32, i32) {
    %c0_i32 = arith.constant 0 : i32
    %c0_i32_0 = arith.constant 0 : i32
    %c0_i32_1 = arith.constant 0 : i32
    return %c0_i32, %c0_i32_0 : i32, i32
  }
  func.func @transform_4(%arg0: i32, %arg1: i32) -> (i32, i32, i32) {
    %c0_i32 = arith.constant 0 : i32
    %c0_i32_0 = arith.constant 0 : i32
    return %arg0, %arg1, %c0_i32 : i32, i32, i32
  }
}

</mosaic_0001>

<bundles_post_ra>
// kernel: tpu_custom_call.1
= control target key start
LH: loop header
LB: loop body
LE: loop exit
PB: predicated region body
PF: predicated region fallthrough
CT: control target
= control target key end

     0   :  { %s3002_s15 = smov 0   ;;  %s3004_s16 = smov 0   ;;  %s4300_s0 = inlined_call_operand.vmem [shape: f32[2,2,198,4], index: 0, kind: input, shape index: {}]   ;;  %s4301_s1 = inlined_call_operand.vmem [shape: f32[3,3,4,8], index: 1, kind: input, shape index: {}]   ;;  %s4302_s2 = inlined_call_operand.vmem [shape: f32[1,8], index: 2, kind: input, shape index: {}]   ;;  %s4303_s3 = inlined_call_operand.vmem [shape: f32[1,8], index: 3, kind: input, shape index: {}]   ;;  %s4304_s4 = inlined_call_operand.vmem [shape: f32[2,256,8], index: 4, kind: output, shape index: {}]  }
   0x1   :  { %s3006_s17 = smov 0   ;;  %s3008_s18 = smov 0  }
   0x2   :  { %s3010_s19 = smov 0  }
   0x3 LB: > { %s23_s20 = sadd.s32 1, %s2967_s17  ;;  %s26_s21 = sadd.s32 1, %s2971_s18  ;;  %s2975_s19 = sphi %s3010_s19, %s14_s19   ;;  %s2971_s18 = sphi %s3008_s18, %s4309_s18   ;;  %s2967_s17 = sphi %s3006_s17, %s4308_s17   ;;  %s2963_s16 = sphi %s3004_s16, %s4307_s16   ;;  %s2959_s15 = sphi %s3002_s15, %s4306_s15  }
   0x4   : > { %p24_p0 = scmp.ge.s32.totalorder %s23_s20, 2  ;;  %p2693_p1 = scmp.ge.s32.totalorder %s2975_s19, 1 }
   0x5   : > { %p182_p2 = scmp.lt.s32.totalorder %s2975_s19, 5 }
   0x6   : > { %s4311_s20 = smov (%p24_p0, %s23_s20), 0  ;;  %s4313_s21 = smov (!%p24_p0, %s26_s21), %s2971_s18 }
   0x7   : > { %p183_p3 = pnand %p2693_p1, %p182_p2  ;;  %p28_p4 = scmp.ge.s32.totalorder %s4313_s21, 2 }
   0x8   : > { %p216_p5 = scmp.lt.s32.totalorder (!%p183_p3), %s2963_s16, 1  ;;  %p218_p6 = scmp.lt.s32.totalorder (!%p183_p3), %s2959_s15, 1 }
   0x9   : > { %s4315_s21 = smov (%p28_p4, %s4313_s21), 0  ;;  %186 = sbr.rel (%p183_p3) target bundleno = 567 (0x237), region = 36 }
   0xe   : > { %v254_v0 = vld [vmem:[%s4301_s1] sm:$0xf]  ;;  %vm313_vm0 = vcmask 1043456   ;;  %v2718_v1 = vld [vmem:[%s4301_s1 + $0x4] sm:$0xf]  ;;  %s4317_s16 = smov (!%p216_p5, %s2963_s16), 1 }
   0xf   : > { %2888 = vmatpush.msk.msra.mxu1 %vm313_vm0, %v254_v0  ;;  %2889 = vmatpush.msk.msra.mxu2 %vm313_vm0, %v254_v0  ;;  %v2739_v2 = vld [vmem:[%s4301_s1 + $0x8] sm:$0xf]  ;;  %v2760_v3 = vld [vmem:[%s4301_s1 + $0xc] sm:$0xf]  ;;  %s219_s30 = scalar_select %p218_p6, %s2959_s15, 1  ;;  %vm255_vm1 = vcmask 31744  }
  0x10   : > { %2890 = vmatpush.msk.msra.mxu3 %vm313_vm0, %v254_v0  ;;  %2698 = vmatpush.msk.msra.mxu0 %vm313_vm0, %v254_v0  ;;  %v2781_v4 = vld [vmem:[%s4301_s1 + $0x10] sm:$0xf]  ;;  %s2892_s7 = smul.u32 50, %s4317_s16  ;;  %v2802_v13 = vld [vmem:[%s4301_s1 + $0x14] sm:$0xf]  ;;  %vm390_vm2 = vcmask 64512  }
  0x11   : > { %2719 = vmatpush.msk.msrb.mxu1 %vm313_vm0, %v2718_v1  ;;  %2740 = vmatpush.msk.msrb.mxu2 %vm313_vm0, %v2739_v2  ;;  %s2891_s8 = smul.u32 25, %s219_s30  ;;  %v2844_v18 = vld [vmem:[%s4301_s1 + $0x1c] sm:$0xf]  ;;  %v2823_v19 = vld [vmem:[%s4301_s1 + $0x18] sm:$0xf]  ;;  %vm525_vm3 = vcmask 1046528  }
  0x12   : > { %2761 = vmatpush.msk.msrb.mxu3 %vm313_vm0, %v2760_v3  ;;  %2782 = vmatpush.msk.msrb.mxu0 %vm313_vm0, %v2781_v4  ;;  %v2865_v28 = vld [vmem:[%s4301_s1 + $0x20] sm:$0xf]  ;;  %vm733_vm4 = vcmask 1045504  }
  0x13   : > { %s222_s9 = sadd.s32 %s2892_s7, %s2891_s8  ;;  %s2695_s7 = sshll.u32 %s2959_s15, 4 }
  0x14   : > { %s2694_s10 = sshll.u32 %s222_s9, 3  ;;  %p3828_p7 = scmp.lt.s32.totalorder %s2695_s7, 31 }
  0x15   : > { %s3065_s13 = scalar_lea.vmem %s4300_s0, %s2694_s10  ;;  %s2696_s9 = sshll.u32 %s4317_s16, 5 }
  0x16   : > { %v3068_v5 = vld [vmem:[%s3065_s13 + $0x28] sm:$0xff]  ;;  %v3071_v6 = vld [vmem:[%s3065_s13 + $0x50] sm:$0xff]  ;;  %v3078_v7 = vld [vmem:[%s3065_s13 + $0x78] sm:$0xff]  ;;  %s4319_s7 = smov (!%p3828_p7, %s2695_s7), 31 }
  0x17   : > { %2704 = vmatmul.msk.f32.vlgmr.msra.gmra.mxu1 %vm255_vm1, %v3068_v5  ;;  %2709 = vmatmul.msk.f32.vlgmr.msra.gmra.mxu2 %vm255_vm1, %v3071_v6  ;;  %v235_v8 = vld [vmem:[%s3065_s13] sm:$0xff]  ;;  %v3085_v9 = vld [vmem:[%s3065_s13 + $0x30] sm:$0xff]  ;;  %v3088_v10 = vld [vmem:[%s3065_s13 + $0x58] sm:$0xff]  ;;  %s231_s15 = sadd.s32 %s2696_s9, %s4319_s7 }
  0x18   : > { %2714 = vmatmul.msk.f32.vlgmr.msra.gmra.mxu3 %vm255_vm1, %v3078_v7  ;;  %2699 = vmatmul.msk.f32.vlgmr.msra.gmra.mxu0 %vm255_vm1, %v235_v8  ;;  %v3091_v11 = vld [vmem:[%s3065_s13 + $0x80] sm:$0xff]  ;;  %v236_v12 = vld [vmem:[%s3065_s13 + $0x8] sm:$0xff]  ;;  %v3106_v14 = vld [vmem:[%s3065_s13 + $0x38] sm:$0xff]  ;;  %s2697_s16 = sshll.u32 %s231_s15, 3 }
  0x19   : > { %2803 = vmatpush.msk.msra.mxu1 %vm313_vm0, %v2802_v13  ;;  %v3109_v15 = vld [vmem:[%s3065_s13 + $0x60] sm:$0xff]  ;;  %v3112_v16 = vld [vmem:[%s3065_s13 + $0x88] sm:$0xff]  ;;  %v237_v17 = vld [vmem:[%s3065_s13 + $0x10] sm:$0xff]  ;;  %2845 = vmatpush.msk.msra.mxu3 %vm313_vm0, %v2844_v18  ;;  %s3888_s12 = scalar_lea.vmem %s4304_s4, %s2697_s16 }
  0x1a   : > { %2824 = vmatpush.msk.msra.mxu2 %vm313_vm0, %v2823_v19  ;;  %v243_v20 = vld [vmem:[%s3065_s13 + $0x40] sm:$0xff]  ;;  %v3132_v21 = vld [vmem:[%s3065_s13 + $0x68] sm:$0xff]  ;;  %v3135_v22 = vld [vmem:[%s3065_s13 + $0x90] sm:$0x3]  ;;  %2866 = vmatpush.msk.msra.mxu0 %vm313_vm0, %v2865_v28 }
  0x1b   : > { %v238_v23 = vld [vmem:[%s3065_s13 + $0x18] sm:$0xff]  ;;  %v244_v24 = vld [vmem:[%s3065_s13 + $0x48] sm:$0xff]  ;;  %v3146_v25 = vld [vmem:[%s3065_s13 + $0x70] sm:$0xff] }
  0x1c   : > { %v3149_v26 = vld [vmem:[%s3065_s13 + $0x12] sm:$0xff]  ;;  %v239_v27 = vld [vmem:[%s3065_s13 + $0x20] sm:$0xff]  ;;  %v3181_v31 = vld [vmem:[%s3065_s13 + $0x2a] sm:$0xff] }
  0x1d   : > { %v3163_v29 = vld [vmem:[%s3065_s13 + $0x1a] sm:$0xff]  ;;  %v3172_v30 = vld [vmem:[%s3065_s13 + $0x22] sm:$0xff]  ;;  %v3190_v32 = vld [vmem:[%s3065_s13 + $0x32] sm:$0xff] }
  0x1e   : > { %v3199_v33 = vld [vmem:[%s3065_s13 + $0x3a] sm:$0xff]  ;;  %v3208_v34 = vld [vmem:[%s3065_s13 + $0x42] sm:$0xff]  ;;  %v3219_v35 = vld [vmem:[%s3065_s13 + $0x4a] sm:$0xff] }
  0x1f   : > { %2705 = vmatmul.msk.f32.gmra.mxu1 %vm255_vm1, %v3085_v9  ;;  %2710 = vmatmul.msk.f32.gmra.mxu2 %vm255_vm1, %v3088_v10  ;;  %v3230_v36 = vld [vmem:[%s3065_s13 + $0x52] sm:$0xff]  ;;  %v3241_v37 = vld [vmem:[%s3065_s13 + $0x5a] sm:$0xff]  ;;  %v3250_v38 = vld [vmem:[%s3065_s13 + $0x62] sm:$0xff] }
  0x20   : > { %2715 = vmatmul.msk.f32.gmra.mxu3 %vm255_vm1, %v3091_v11  ;;  %2700 = vmatmul.msk.f32.gmra.mxu0 %vm255_vm1, %v236_v12  ;;  %v3259_v39 = vld [vmem:[%s3065_s13 + $0x6a] sm:$0xff]  ;;  %v3271_v41 = vld [vmem:[%s3065_s13 + $0x72] sm:$0xff]  ;;  %v3286_v46 = vld [vmem:[%s3065_s13 + $0x7a] sm:$0xff] }
  0x21   : > { %v3301_v51 = vld [vmem:[%s3065_s13 + $0x82] sm:$0xff]  ;;  %v3316_v56 = vld [vmem:[%s3065_s13 + $0x8a] sm:$0xff]  ;;  %v3330_v61 = vld [vmem:[%s3065_s13 + $0x92] sm:$0xff] }
  0x22   : > { %v3345_v2 = vld [vmem:[%s3065_s13 + $0x9a] sm:$0xff] }
  0x27   : > { %2706 = vmatmul.msk.f32.gmra.mxu1 %vm255_vm1, %v3106_v14  ;;  %2711 = vmatmul.msk.f32.gmra.mxu2 %vm255_vm1, %v3109_v15 }
  0x28   : > { %2716 = vmatmul.msk.f32.gmra.mxu3 %vm255_vm1, %v3112_v16  ;;  %2701 = vmatmul.msk.f32.gmra.mxu0 %vm255_vm1, %v237_v17 }
  0x2f   : > { %2707 = vmatmul.msk.f32.gmra.mxu1 %vm255_vm1, %v243_v20  ;;  %2712 = vmatmul.msk.f32.gmra.mxu2 %vm255_vm1, %v3132_v21 }
  0x30   : > { %2717 = vmatmul.msk.f32.gmra.mxu3 %vm255_vm1, %v3135_v22  ;;  %2702 = vmatmul.msk.f32.gmra.mxu0 %vm255_vm1, %v238_v23 }
  0x37   : > { %2708 = vmatmul.msk.f32.gmra.mxu1 %vm255_vm1, %v244_v24  ;;  %2713 = vmatmul.msk.f32.gmra.mxu2 %vm255_vm1, %v3146_v25 }
  0x38   : > { %2762 = vmatmul.msk.f32.vlgmr.msrb.gmra.mxu3 %vm255_vm1, %v3149_v26  ;;  %2703 = vmatmul.msk.f32.gmra.mxu0 %vm255_vm1, %v239_v27 }
  0x3f   : > { %2720 = vmatmul.msk.f32.vlgmr.msrb.gmra.mxu1 %vm255_vm1, %v235_v8  ;;  %2741 = vmatmul.msk.f32.vlgmr.msrb.gmra.mxu2 %vm255_vm1, %v235_v8 }
  0x40   : > { %2763 = vmatmul.msk.f32.gmra.mxu3 %vm255_vm1, %v3163_v29  ;;  %2783 = vmatmul.msk.f32.vlgmr.msrb.gmra.mxu0 %vm255_vm1, %v3149_v26 }
  0x47   : > { %2721 = vmatmul.msk.f32.gmra.mxu1 %vm255_vm1, %v236_v12  ;;  %2742 = vmatmul.msk.f32.gmra.mxu2 %vm255_vm1, %v236_v12 }
  0x48   : > { %2764 = vmatmul.msk.f32.gmra.mxu3 %vm255_vm1, %v3172_v30  ;;  %2784 = vmatmul.msk.f32.gmra.mxu0 %vm255_vm1, %v3163_v29 }
  0x4f   : > { %2722 = vmatmul.msk.f32.gmra.mxu1 %vm255_vm1, %v237_v17  ;;  %2743 = vmatmul.msk.f32.gmra.mxu2 %vm255_vm1, %v237_v17 }
  0x50   : > { %2765 = vmatmul.msk.f32.gmra.mxu3 %vm255_vm1, %v3181_v31  ;;  %2785 = vmatmul.msk.f32.gmra.mxu0 %vm255_vm1, %v3172_v30 }
  0x57   : > { %2723 = vmatmul.msk.f32.gmra.mxu1 %vm255_vm1, %v238_v23  ;;  %2744 = vmatmul.msk.f32.gmra.mxu2 %vm255_vm1, %v238_v23 }
  0x58   : > { %2766 = vmatmul.msk.f32.gmra.mxu3 %vm255_vm1, %v3190_v32  ;;  %2786 = vmatmul.msk.f32.gmra.mxu0 %vm255_vm1, %v3181_v31 }
  0x5f   : > { %2724 = vmatmul.msk.f32.gmra.mxu1 %vm255_vm1, %v239_v27  ;;  %2745 = vmatmul.msk.f32.gmra.mxu2 %vm255_vm1, %v239_v27 }
  0x60   : > { %2767 = vmatmul.msk.f32.gmra.mxu3 %vm255_vm1, %v3199_v33  ;;  %2787 = vmatmul.msk.f32.gmra.mxu0 %vm255_vm1, %v3190_v32 }
  0x67   : > { %2725 = vmatmul.msk.f32.gmra.mxu1 %vm255_vm1, %v3068_v5  ;;  %2746 = vmatmul.msk.f32.gmra.mxu2 %vm255_vm1, %v3068_v5 }
  0x68   : > { %2768 = vmatmul.msk.f32.gmra.mxu3 %vm255_vm1, %v3208_v34  ;;  %2788 = vmatmul.msk.f32.gmra.mxu0 %vm255_vm1, %v3199_v33 }
  0x6f   : > { %2726 = vmatmul.msk.f32.gmra.mxu1 %vm255_vm1, %v3085_v9  ;;  %2747 = vmatmul.msk.f32.gmra.mxu2 %vm255_vm1, %v3085_v9  ;;  %v3360_v9 = vld [vmem:[%s3065_s13 + $0xa2] sm:$0x3] }
  0x70   : > { %2769 = vmatmul.msk.f32.gmra.mxu3 %vm255_vm1, %v3219_v35  ;;  %2789 = vmatmul.msk.f32.gmra.mxu0 %vm255_vm1, %v3208_v34 }
  0x77   : > { %2727 = vmatmul.msk.f32.gmra.mxu1 %vm255_vm1, %v3106_v14  ;;  %2748 = vmatmul.msk.f32.gmra.mxu2 %vm255_vm1, %v3106_v14 }
  0x78   : > { %2770 = vmatmul.msk.f32.gmra.mxu3 %vm255_vm1, %v3230_v36  ;;  %2790 = vmatmul.msk.f32.gmra.mxu0 %vm255_vm1, %v3219_v35 }
  0x7f   : > { %2728 = vmatmul.msk.f32.gmra.mxu1 %vm255_vm1, %v243_v20  ;;  %2749 = vmatmul.msk.f32.gmra.mxu2 %vm255_vm1, %v243_v20 }
  0x80   : > { %2771 = vmatmul.msk.f32.gmra.mxu3 %vm255_vm1, %v3241_v37  ;;  %2791 = vmatmul.msk.f32.gmra.mxu0 %vm255_vm1, %v3230_v36 }
  0x87   : > { %2729 = vmatmul.msk.f32.gmra.mxu1 %vm255_vm1, %v244_v24  ;;  %2750 = vmatmul.msk.f32.gmra.mxu2 %vm255_vm1, %v244_v24 }
  0x88   : > { %2772 = vmatmul.msk.f32.gmra.mxu3 %vm255_vm1, %v3250_v38  ;;  %2792 = vmatmul.msk.f32.gmra.mxu0 %vm255_vm1, %v3241_v37 }
  0x8f   : > { %2730 = vmatmul.msk.f32.gmra.mxu1 %vm255_vm1, %v3071_v6  ;;  %2751 = vmatmul.msk.f32.gmra.mxu2 %vm255_vm1, %v3071_v6 }
  0x90   : > { %2773 = vmatmul.msk.f32.gmra.mxu3 %vm255_vm1, %v3259_v39  ;;  %2793 = vmatmul.msk.f32.gmra.mxu0 %vm255_vm1, %v3250_v38 }
  0x94   : > { %v349_v40 = vpop.f32.mrf.mxu1 }
  0x95   : > { %396 = vst.msk [vmem:[#allocation2 + $0x28] sm:$0xff] %vm390_vm2, %v349_v40  ;;  %v334_v42 = vpop.f32.mrf.mxu0 }
  0x96   : > { %391 = vst.msk [vmem:[#allocation2] sm:$0xff] %vm390_vm2, %v334_v42 }
  0x97   : > { %2731 = vmatmul.msk.f32.gmra.mxu1 %vm255_vm1, %v3088_v10  ;;  %2752 = vmatmul.msk.f32.gmra.mxu2 %vm255_vm1, %v3088_v10 }
  0x98   : > { %2774 = vmatmul.msk.f32.gmra.mxu3 %vm255_vm1, %v3271_v41  ;;  %2794 = vmatmul.msk.f32.gmra.mxu0 %vm255_vm1, %v3259_v39 }
  0x9a   : > { %v364_v43 = vpop.f32.mrf.mxu2 }
  0x9b   : > { %401 = vst.msk [vmem:[#allocation2 + $0x50] sm:$0xff] %vm390_vm2, %v364_v43  ;;  %v379_v44 = vpop.f32.mrf.mxu3 }
  0x9c   : > { %v352_v45 = vpop.f32.mrf.mxu1  ;;  %406 = vst.msk [vmem:[#allocation2 + $0x78] sm:$0xff] %vm390_vm2, %v379_v44 }
  0x9d   : > { %397 = vst.msk [vmem:[#allocation2 + $0x30] sm:$0xff] %vm390_vm2, %v352_v45  ;;  %v337_v47 = vpop.f32.mrf.mxu0  ;;  %v488_v12 = vld [vmem:[#allocation2] sm:$0xff] }
  0x9e   : > { %392 = vst.msk [vmem:[#allocation2 + $0x8] sm:$0xff] %vm390_vm2, %v337_v47 }
  0x9f   : > { %2732 = vmatmul.msk.f32.gmra.mxu1 %vm255_vm1, %v3109_v15  ;;  %2753 = vmatmul.msk.f32.gmra.mxu2 %vm255_vm1, %v3109_v15 }
  0xa0   : > { %2775 = vmatmul.msk.f32.gmra.mxu3 %vm255_vm1, %v3286_v46  ;;  %2795 = vmatmul.msk.f32.gmra.mxu0 %vm255_vm1, %v3271_v41 }
  0xa2   : > { %v367_v48 = vpop.f32.mrf.mxu2 }
  0xa3   : > { %402 = vst.msk [vmem:[#allocation2 + $0x58] sm:$0xff] %vm390_vm2, %v367_v48  ;;  %v382_v49 = vpop.f32.mrf.mxu3  ;;  %v1448_v48 = vld [vmem:[%s3065_s13 + $0x2c] sm:$0xff] }
  0xa4   : > { %v355_v50 = vpop.f32.mrf.mxu1  ;;  %407 = vst.msk [vmem:[#allocation2 + $0x80] sm:$0xff] %vm390_vm2, %v382_v49 }
  0xa5   : > { %398 = vst.msk [vmem:[#allocation2 + $0x38] sm:$0xff] %vm390_vm2, %v355_v50  ;;  %v340_v52 = vpop.f32.mrf.mxu0 }
  0xa6   : > { %393 = vst.msk [vmem:[#allocation2 + $0x10] sm:$0xff] %vm390_vm2, %v340_v52 }
  0xa7   : > { %2733 = vmatmul.msk.f32.gmra.mxu1 %vm255_vm1, %v3132_v21  ;;  %2754 = vmatmul.msk.f32.gmra.mxu2 %vm255_vm1, %v3132_v21  ;;  %v1447_v21 = vld [vmem:[%s3065_s13 + $0x24] sm:$0xff] }
  0xa8   : > { %2776 = vmatmul.msk.f32.gmra.mxu3 %vm255_vm1, %v3301_v51  ;;  %2796 = vmatmul.msk.f32.gmra.mxu0 %vm255_vm1, %v3286_v46 }
  0xaa   : > { %v370_v53 = vpop.f32.mrf.mxu2 }
  0xab   : > { %403 = vst.msk [vmem:[#allocation2 + $0x60] sm:$0xff] %vm390_vm2, %v370_v53  ;;  %v385_v54 = vpop.f32.mrf.mxu3 }
  0xac   : > { %v358_v55 = vpop.f32.mrf.mxu1  ;;  %408 = vst.msk [vmem:[#allocation2 + $0x88] sm:$0xff] %vm390_vm2, %v385_v54 }
  0xad   : > { %399 = vst.msk [vmem:[#allocation2 + $0x40] sm:$0xff] %vm390_vm2, %v358_v55  ;;  %v343_v57 = vpop.f32.mrf.mxu0  ;;  %v490_v49 = vld [vmem:[#allocation2 + $0x10] sm:$0xff] }
  0xae   : > { %394 = vst.msk [vmem:[#allocation2 + $0x18] sm:$0xff] %vm390_vm2, %v343_v57 }
  0xaf   : > { %2734 = vmatmul.msk.f32.gmra.mxu1 %vm255_vm1, %v3146_v25  ;;  %2755 = vmatmul.msk.f32.gmra.mxu2 %vm255_vm1, %v3146_v25 }
  0xb0   : > { %2777 = vmatmul.msk.f32.gmra.mxu3 %vm255_vm1, %v3316_v56  ;;  %2797 = vmatmul.msk.f32.gmra.mxu0 %vm255_vm1, %v3301_v51 }
  0xb2   : > { %v373_v58 = vpop.f32.mrf.mxu2 }
  0xb3   : > { %404 = vst.msk [vmem:[#allocation2 + $0x68] sm:$0xff] %vm390_vm2, %v373_v58  ;;  %v388_v59 = vpop.f32.mrf.mxu3 }
  0xb4   : > { %v361_v60 = vpop.f32.mrf.mxu1 }
  0xb5   : > { %400 = vst.msk [vmem:[#allocation2 + $0x48] sm:$0xff] %vm390_vm2, %v361_v60  ;;  %v346_v62 = vpop.f32.mrf.mxu0 }
  0xb6   : > { %395 = vst.msk [vmem:[#allocation2 + $0x20] sm:$0xff] %vm390_vm2, %v346_v62 }
  0xb7   : > { %2735 = vmatmul.msk.f32.gmra.mxu1 %vm255_vm1, %v3078_v7  ;;  %2756 = vmatmul.msk.f32.gmra.mxu2 %vm255_vm1, %v3078_v7 }
  0xb8   : > { %2778 = vmatmul.msk.f32.gmra.mxu3 %vm255_vm1, %v3330_v61  ;;  %2798 = vmatmul.msk.f32.gmra.mxu0 %vm255_vm1, %v3316_v56 }
  0xba   : > { %v376_v63 = vpop.f32.mrf.mxu2 }
  0xbb   : > { %405 = vst.msk [vmem:[#allocation2 + $0x70] sm:$0xff] %vm390_vm2, %v376_v63  ;;  %v3342_v0 = vpop.f32.mrf.mxu3 }
  0xbc   : > { %v431_v1 = vpop.f32.mrf.mxu1 }
  0xbd   : > { %v3347_v3 = vpop.f32.mrf.mxu0  ;;  %v526_v7 = vrot.slane %v431_v1, 1  ;;  %v1449_v1 = vld [vmem:[%s3065_s13 + $0x34] sm:$0xff] }
  0xbf   : > { %2736 = vmatmul.msk.f32.gmra.mxu1 %vm255_vm1, %v3091_v11  ;;  %2757 = vmatmul.msk.f32.gmra.mxu2 %vm255_vm1, %v3091_v11 }
  0xc0   : > { %2779 = vmatmul.msk.f32.gmra.mxu3 %vm255_vm1, %v3345_v2  ;;  %2799 = vmatmul.msk.f32.gmra.mxu0 %vm255_vm1, %v3330_v61 }
  0xc2   : > { %v639_v4 = vpop.f32.mrf.mxu2 }
  0xc3   : > { %v3357_v5 = vpop.f32.mrf.mxu3  ;;  %v734_v15 = vrot.slane %v639_v4, 2 }
  0xc4   : > { %v434_v6 = vpop.f32.mrf.mxu1 }
  0xc5   : > { %v527_v8 = vrot.slane %v434_v6, 1  ;;  %v3362_v10 = vpop.f32.mrf.mxu0  ;;  %v491_v6 = vld [vmem:[#allocation2 + $0x18] sm:$0xff] }
  0xc7   : > { %v528_v11 = vsel %vm525_vm3, %v526_v7, %v527_v8  ;;  %2737 = vmatmul.msk.f32.gmra.mxu1 %vm255_vm1, %v3112_v16  ;;  %2758 = vmatmul.msk.f32.gmra.mxu2 %vm255_vm1, %v3112_v16  ;;  %v489_v16 = vld [vmem:[#allocation2 + $0x8] sm:$0xff] }
  0xc8   : > { %v581_v13 = vadd.f32 %v528_v11, %v488_v12  ;;  %2780 = vmatmul.msk.f32.gmra.mxu3 %vm255_vm1, %v3360_v9  ;;  %2800 = vmatmul.msk.f32.gmra.mxu0 %vm255_vm1, %v3345_v2  ;;  %v1150_v11 = vrot.slane %v3362_v10, 1 }
  0xca   : > { %599 = vst.msk [vmem:[#allocation2] sm:$0xff] %vm390_vm2, %v581_v13  ;;  %v642_v14 = vpop.f32.mrf.mxu2 }
  0xcb   : > { %v735_v17 = vrot.slane %v642_v14, 2  ;;  %v3374_v18 = vpop.f32.mrf.mxu3 }
  0xcc   : > { %v437_v19 = vpop.f32.mrf.mxu1 }
  0xcd   : > { %v529_v20 = vrot.slane %v437_v19, 1  ;;  %v3377_v23 = vpop.f32.mrf.mxu0  ;;  %v736_v25 = vsel %vm733_vm4, %v734_v15, %v735_v17 }
  0xcf   : > { %v530_v24 = vsel %vm525_vm3, %v527_v8, %v529_v20  ;;  %2738 = vmatmul.msk.f32.gmra.mxu1 %vm255_vm1, %v3135_v22  ;;  %2759 = vmatmul.msk.f32.gmra.mxu2 %vm255_vm1, %v3135_v22 }
  0xd0   : > { %v582_v27 = vadd.f32 %v530_v24, %v489_v16  ;;  %2846 = vmatmul.msk.f32.vlgmr.msra.gmra.mxu3 %vm255_vm1, %v1447_v21  ;;  %2801 = vmatmul.msk.f32.gmra.mxu0 %vm255_vm1, %v3360_v9  ;;  %v1450_v24 = vld [vmem:[%s3065_s13 + $0x3c] sm:$0xff] }
  0xd1   : > { %v696_v28 = vld [vmem:[#allocation2] sm:$0xff] }
  0xd2   : > { %600 = vst.msk [vmem:[#allocation2 + $0x8] sm:$0xff] %vm390_vm2, %v582_v27  ;;  %v789_v40 = vadd.f32 %v736_v25, %v696_v28  ;;  %v645_v42 = vpop.f32.mrf.mxu2  ;;  %v492_v28 = vld [vmem:[#allocation2 + $0x20] sm:$0xff] }
  0xd3   : > { %v737_v43 = vrot.slane %v645_v42, 2  ;;  %v3389_v44 = vpop.f32.mrf.mxu3 }
  0xd4   : > { %807 = vst.msk [vmem:[#allocation2] sm:$0xff] %vm390_vm2, %v789_v40  ;;  %v440_v45 = vpop.f32.mrf.mxu1 }
  0xd5   : > { %v531_v47 = vrot.slane %v440_v45, 1  ;;  %v3393_v22 = vpop.f32.mrf.mxu0  ;;  %v738_v52 = vsel %vm733_vm4, %v735_v17, %v737_v43 }
  0xd7   : > { %v532_v50 = vsel %vm525_vm3, %v529_v20, %v531_v47  ;;  %2804 = vmatmul.msk.f32.vlgmr.msra.gmra.mxu1 %vm255_vm1, %v3149_v26  ;;  %2825 = vmatmul.msk.f32.vlgmr.msra.gmra.mxu2 %vm255_vm1, %v1447_v21 }
  0xd8   : > { %v583_v53 = vadd.f32 %v532_v50, %v490_v49  ;;  %2847 = vmatmul.msk.f32.gmra.mxu3 %vm255_vm1, %v1448_v48  ;;  %2867 = vmatmul.msk.f32.vlgmr.msra.gmra.mxu0 %vm255_vm1, %v1447_v21 }
  0xd9   : > { %v697_v54 = vld [vmem:[#allocation2 + $0x8] sm:$0xff] }
  0xda   : > { %601 = vst.msk [vmem:[#allocation2 + $0x10] sm:$0xff] %vm390_vm2, %v583_v53  ;;  %v790_v55 = vadd.f32 %v738_v52, %v697_v54  ;;  %v648_v57 = vpop.f32.mrf.mxu2 }
  0xdb   : > { %v979_v58 = vld [vmem:[#allocation2] sm:$0xff]  ;;  %v739_v59 = vrot.slane %v648_v57, 2  ;;  %v3403_v60 = vpop.f32.mrf.mxu3 }
  0xdc   : > { %808 = vst.msk [vmem:[#allocation2 + $0x8] sm:$0xff] %vm390_vm2, %v790_v55  ;;  %v997_v26 = vadd.f32 %v979_v58, %v3342_v0  ;;  %v443_v62 = vpop.f32.mrf.mxu1  ;;  %v1149_v0 = vrot.slane %v3347_v3, 1  ;;  %v1451_v57 = vld [vmem:[%s3065_s13 + $0x44] sm:$0xff] }
  0xdd   : > { %v533_v63 = vrot.slane %v443_v62, 1  ;;  %v3409_v4 = vpop.f32.mrf.mxu0  ;;  %v740_v8 = vsel %vm733_vm4, %v737_v43, %v739_v59  ;;  %v1152_v43 = vrot.slane %v3377_v23, 1 }
  0xde   : > { %1015 = vst.msk [vmem:[#allocation2] sm:$0xff] %vm390_vm2, %v997_v26  ;;  %v1151_v16 = vsel %vm525_vm3, %v1149_v0, %v1150_v11  ;;  %v493_v26 = vld [vmem:[#allocation2 + $0x28] sm:$0xff] }
  0xdf   : > { %v534_v7 = vsel %vm525_vm3, %v531_v47, %v533_v63  ;;  %2805 = vmatmul.msk.f32.gmra.mxu1 %vm255_vm1, %v3163_v29  ;;  %2826 = vmatmul.msk.f32.gmra.mxu2 %vm255_vm1, %v1448_v48  ;;  %v1153_v55 = vsel %vm525_vm3, %v1150_v11, %v1152_v43 }
  0xe0   : > { %v584_v12 = vadd.f32 %v534_v7, %v491_v6  ;;  %2848 = vmatmul.msk.f32.gmra.mxu3 %vm255_vm1, %v1449_v1  ;;  %2868 = vmatmul.msk.f32.gmra.mxu0 %vm255_vm1, %v1448_v48 }
  0xe1   : > { %v698_v13 = vld [vmem:[#allocation2 + $0x10] sm:$0xff] }
  0xe2   : > { %602 = vst.msk [vmem:[#allocation2 + $0x18] sm:$0xff] %vm390_vm2, %v584_v12  ;;  %v791_v14 = vadd.f32 %v740_v8, %v698_v13  ;;  %v651_v15 = vpop.f32.mrf.mxu2 }
  0xe3   : > { %v980_v17 = vld [vmem:[#allocation2 + $0x8] sm:$0xff]  ;;  %v741_v19 = vrot.slane %v651_v15, 2  ;;  %v3421_v29 = vpop.f32.mrf.mxu3 }
  0xe4   : > { %809 = vst.msk [vmem:[#allocation2 + $0x10] sm:$0xff] %vm390_vm2, %v791_v14  ;;  %v998_v20 = vadd.f32 %v980_v17, %v3357_v5  ;;  %v446_v21 = vpop.f32.mrf.mxu1  ;;  %v1452_v17 = vld [vmem:[%s3065_s13 + $0x4c] sm:$0xff] }
  0xe5   : > { %v1112_v3 = vld [vmem:[#allocation2] sm:$0xff]  ;;  %v535_v10 = vrot.slane %v446_v21, 1  ;;  %v3428_v27 = vpop.f32.mrf.mxu0  ;;  %v742_v42 = vsel %vm733_vm4, %v739_v59, %v741_v19  ;;  %v494_v21 = vld [vmem:[#allocation2 + $0x30] sm:$0xff] }
  0xe6   : > { %v1204_v25 = vadd.f32 %v1151_v16, %v1112_v3  ;;  %1016 = vst.msk [vmem:[#allocation2 + $0x8] sm:$0xff] %vm390_vm2, %v998_v20 }
  0xe7   : > { %v536_v40 = vsel %vm525_vm3, %v533_v63, %v535_v10  ;;  %2806 = vmatmul.msk.f32.gmra.mxu1 %vm255_vm1, %v3172_v30  ;;  %2827 = vmatmul.msk.f32.gmra.mxu2 %vm255_vm1, %v1449_v1 }
  0xe8   : > { %1222 = vst.msk [vmem:[#allocation2] sm:$0xff] %vm390_vm2, %v1204_v25  ;;  %v585_v5 = vadd.f32 %v536_v40, %v492_v28  ;;  %2849 = vmatmul.msk.f32.gmra.mxu3 %vm255_vm1, %v1450_v24  ;;  %2869 = vmatmul.msk.f32.gmra.mxu0 %vm255_vm1, %v1449_v1  ;;  %v1154_v1 = vrot.slane %v3393_v22, 1 }
  0xe9   : > { %v699_v45 = vld [vmem:[#allocation2 + $0x18] sm:$0xff] }
  0xea   : > { %603 = vst.msk [vmem:[#allocation2 + $0x20] sm:$0xff] %vm390_vm2, %v585_v5  ;;  %v792_v47 = vadd.f32 %v742_v42, %v699_v45  ;;  %v654_v48 = vpop.f32.mrf.mxu2  ;;  %v1155_v15 = vsel %vm525_vm3, %v1152_v43, %v1154_v1 }
  0xeb   : > { %v981_v49 = vld [vmem:[#allocation2 + $0x10] sm:$0xff]  ;;  %v743_v50 = vrot.slane %v654_v48, 2  ;;  %v3440_v30 = vpop.f32.mrf.mxu3 }
  0xec   : > { %810 = vst.msk [vmem:[#allocation2 + $0x18] sm:$0xff] %vm390_vm2, %v792_v47  ;;  %v999_v52 = vadd.f32 %v981_v49, %v3374_v18  ;;  %v449_v53 = vpop.f32.mrf.mxu1  ;;  %v1453_v48 = vld [vmem:[%s3065_s13 + $0x54] sm:$0xff] }
  0xed   : > { %v1113_v54 = vld [vmem:[#allocation2 + $0x8] sm:$0xff]  ;;  %v537_v23 = vrot.slane %v449_v53, 1  ;;  %v3447_v59 = vpop.f32.mrf.mxu0  ;;  %v744_v63 = vsel %vm733_vm4, %v741_v19, %v743_v50 }
  0xee   : > { %v1205_v58 = vadd.f32 %v1153_v55, %v1113_v54  ;;  %1017 = vst.msk [vmem:[#allocation2 + $0x10] sm:$0xff] %vm390_vm2, %v999_v52  ;;  %v495_v52 = vld [vmem:[#allocation2 + $0x38] sm:$0xff]  ;;  %v1158_v55 = vrot.slane %v3428_v27, 1 }
  0xef   : > { %v538_v62 = vsel %vm525_vm3, %v535_v10, %v537_v23  ;;  %2807 = vmatmul.msk.f32.gmra.mxu1 %vm255_vm1, %v3181_v31  ;;  %2828 = vmatmul.msk.f32.gmra.mxu2 %vm255_vm1, %v1450_v24  ;;  %v1156_v10 = vrot.slane %v3409_v4, 1 }
  0xf0   : > { %1223 = vst.msk [vmem:[#allocation2 + $0x8] sm:$0xff] %vm390_vm2, %v1205_v58  ;;  %v586_v18 = vadd.f32 %v538_v62, %v493_v26  ;;  %2850 = vmatmul.msk.f32.gmra.mxu3 %vm255_vm1, %v1451_v57  ;;  %2870 = vmatmul.msk.f32.gmra.mxu0 %vm255_vm1, %v1450_v24 }
  0xf1   : > { %v700_v6 = vld [vmem:[#allocation2 + $0x20] sm:$0xff]  ;;  %v1157_v47 = vsel %vm525_vm3, %v1154_v1, %v1156_v10 }
  0xf2   : > { %604 = vst.msk [vmem:[#allocation2 + $0x28] sm:$0xff] %vm390_vm2, %v586_v18  ;;  %v793_v7 = vadd.f32 %v744_v63, %v700_v6  ;;  %v657_v8 = vpop.f32.mrf.mxu2  ;;  %v1159_v6 = vsel %vm525_vm3, %v1156_v10, %v1158_v55 }
  0xf3   : > { %v982_v12 = vld [vmem:[#allocation2 + $0x18] sm:$0xff]  ;;  %v745_v0 = vrot.slane %v657_v8, 2  ;;  %v3459_v31 = vpop.f32.mrf.mxu3 }
  0xf4   : > { %811 = vst.msk [vmem:[#allocation2 + $0x20] sm:$0xff] %vm390_vm2, %v793_v7  ;;  %v1000_v11 = vadd.f32 %v982_v12, %v3389_v44  ;;  %v452_v13 = vpop.f32.mrf.mxu1  ;;  %v1454_v7 = vld [vmem:[%s3065_s13 + $0x5c] sm:$0xff] }
  0xf5   : > { %v1114_v14 = vld [vmem:[#allocation2 + $0x10] sm:$0xff]  ;;  %v539_v22 = vrot.slane %v452_v13, 1  ;;  %v3466_v20 = vpop.f32.mrf.mxu0  ;;  %v746_v16 = vsel %vm733_vm4, %v743_v50, %v745_v0 }
  0xf6   : > { %v1206_v19 = vadd.f32 %v1155_v15, %v1114_v14  ;;  %1018 = vst.msk [vmem:[#allocation2 + $0x18] sm:$0xff] %vm390_vm2, %v1000_v11  ;;  %v1160_v14 = vrot.slane %v3447_v59, 1 }
  0xf7   : > { %v540_v3 = vsel %vm525_vm3, %v537_v23, %v539_v22  ;;  %2808 = vmatmul.msk.f32.gmra.mxu1 %vm255_vm1, %v3190_v32  ;;  %2829 = vmatmul.msk.f32.gmra.mxu2 %vm255_vm1, %v1451_v57 }
  0xf8   : > { %1224 = vst.msk [vmem:[#allocation2 + $0x10] sm:$0xff] %vm390_vm2, %v1206_v19  ;;  %v587_v44 = vadd.f32 %v540_v3, %v494_v21  ;;  %2851 = vmatmul.msk.f32.gmra.mxu3 %vm255_vm1, %v1452_v17  ;;  %2871 = vmatmul.msk.f32.gmra.mxu0 %vm255_vm1, %v1451_v57  ;;  %v1161_v10 = vsel %vm525_vm3, %v1158_v55, %v1160_v14  ;;  %v1456_v55 = vld [vmem:[%s3065_s13 + $0x6c] sm:$0xff] }
  0xf9   : > { %v701_v24 = vld [vmem:[#allocation2 + $0x28] sm:$0xff] }
  0xfa   : > { %605 = vst.msk [vmem:[#allocation2 + $0x30] sm:$0xff] %vm390_vm2, %v587_v44  ;;  %v794_v25 = vadd.f32 %v746_v16, %v701_v24  ;;  %v660_v28 = vpop.f32.mrf.mxu2  ;;  %v1455_v24 = vld [vmem:[%s3065_s13 + $0x64] sm:$0xff] }
  0xfb   : > { %v983_v40 = vld [vmem:[#allocation2 + $0x20] sm:$0xff]  ;;  %v747_v42 = vrot.slane %v660_v28, 2  ;;  %v3478_v32 = vpop.f32.mrf.mxu3 }
  0xfc   : > { %812 = vst.msk [vmem:[#allocation2 + $0x28] sm:$0xff] %vm390_vm2, %v794_v25  ;;  %v1001_v5 = vadd.f32 %v983_v40, %v3403_v60  ;;  %v455_v43 = vpop.f32.mrf.mxu1  ;;  %v497_v40 = vld [vmem:[#allocation2 + $0x48] sm:$0xff] }
  0xfd   : > { %v1115_v45 = vld [vmem:[#allocation2 + $0x18] sm:$0xff]  ;;  %v541_v4 = vrot.slane %v455_v43, 1  ;;  %v3485_v50 = vpop.f32.mrf.mxu0  ;;  %v748_v54 = vsel %vm733_vm4, %v745_v0, %v747_v42  ;;  %v496_v0 = vld [vmem:[#allocation2 + $0x40] sm:$0xff]  ;;  %v1162_v43 = vrot.slane %v3466_v20, 1 }
  0xfe   : > { %v1207_v49 = vadd.f32 %v1157_v47, %v1115_v45  ;;  %1019 = vst.msk [vmem:[#allocation2 + $0x20] sm:$0xff] %vm390_vm2, %v1001_v5 }
  0xff   : > { %v542_v53 = vsel %vm525_vm3, %v539_v22, %v541_v4  ;;  %2809 = vmatmul.msk.f32.gmra.mxu1 %vm255_vm1, %v3199_v33  ;;  %2830 = vmatmul.msk.f32.gmra.mxu2 %vm255_vm1, %v1452_v17 }
 0x100   : > { %1225 = vst.msk [vmem:[#allocation2 + $0x18] sm:$0xff] %vm390_vm2, %v1207_v49  ;;  %v588_v60 = vadd.f32 %v542_v53, %v495_v52  ;;  %2852 = vmatmul.msk.f32.gmra.mxu3 %vm255_vm1, %v1453_v48  ;;  %2872 = vmatmul.msk.f32.gmra.mxu0 %vm255_vm1, %v1452_v17 }
 0x101   : > { %v702_v23 = vld [vmem:[#allocation2 + $0x30] sm:$0xff] }
 0x102   : > { %606 = vst.msk [vmem:[#allocation2 + $0x38] sm:$0xff] %vm390_vm2, %v588_v60  ;;  %v795_v57 = vadd.f32 %v748_v54, %v702_v23  ;;  %v663_v58 = vpop.f32.mrf.mxu2  ;;  %v1163_v60 = vsel %vm525_vm3, %v1160_v14, %v1162_v43 }
 0x103   : > { %v984_v26 = vld [vmem:[#allocation2 + $0x28] sm:$0xff]  ;;  %v749_v62 = vrot.slane %v663_v58, 2  ;;  %v3497_v33 = vpop.f32.mrf.mxu3  ;;  %v498_v58 = vld [vmem:[#allocation2 + $0x50] sm:$0xff] }
 0x104   : > { %813 = vst.msk [vmem:[#allocation2 + $0x30] sm:$0xff] %vm390_vm2, %v795_v57  ;;  %v1002_v63 = vadd.f32 %v984_v26, %v3421_v29  ;;  %v458_v18 = vpop.f32.mrf.mxu1 }
 0x105   : > { %v1116_v1 = vld [vmem:[#allocation2 + $0x20] sm:$0xff]  ;;  %v543_v27 = vrot.slane %v458_v18, 1  ;;  %v3504_v12 = vpop.f32.mrf.mxu0  ;;  %v750_v13 = vsel %vm733_vm4, %v747_v42, %v749_v62 }
 0x106   : > { %v1208_v8 = vadd.f32 %v1159_v6, %v1116_v1  ;;  %1020 = vst.msk [vmem:[#allocation2 + $0x28] sm:$0xff] %vm390_vm2, %v1002_v63  ;;  %v1164_v63 = vrot.slane %v3485_v50, 1 }
 0x107   : > { %v544_v11 = vsel %vm525_vm3, %v541_v4, %v543_v27  ;;  %2810 = vmatmul.msk.f32.gmra.mxu1 %vm255_vm1, %v3208_v34  ;;  %2831 = vmatmul.msk.f32.gmra.mxu2 %vm255_vm1, %v1453_v48 }
 0x108   : > { %1226 = vst.msk [vmem:[#allocation2 + $0x20] sm:$0xff] %vm390_vm2, %v1208_v8  ;;  %v589_v29 = vadd.f32 %v544_v11, %v496_v0  ;;  %2853 = vmatmul.msk.f32.gmra.mxu3 %vm255_vm1, %v1454_v7  ;;  %2873 = vmatmul.msk.f32.gmra.mxu0 %vm255_vm1, %v1453_v48 }
 0x109   : > { %v703_v15 = vld [vmem:[#allocation2 + $0x38] sm:$0xff] }
 0x10a   : > { %607 = vst.msk [vmem:[#allocation2 + $0x40] sm:$0xff] %vm390_vm2, %v589_v29  ;;  %v796_v22 = vadd.f32 %v750_v13, %v703_v15  ;;  %v666_v17 = vpop.f32.mrf.mxu2  ;;  %v1165_v13 = vsel %vm525_vm3, %v1162_v43, %v1164_v63  ;;  %v1457_v29 = vld [vmem:[%s3065_s13 + $0x74] sm:$0xff] }
 0x10b   : > { %v985_v19 = vld [vmem:[#allocation2 + $0x30] sm:$0xff]  ;;  %v751_v21 = vrot.slane %v666_v17, 2  ;;  %v3516_v34 = vpop.f32.mrf.mxu3 }
 0x10c   : > { %814 = vst.msk [vmem:[#allocation2 + $0x38] sm:$0xff] %vm390_vm2, %v796_v22  ;;  %v1003_v3 = vadd.f32 %v985_v19, %v3440_v30  ;;  %v461_v16 = vpop.f32.mrf.mxu1  ;;  %v499_v22 = vld [vmem:[#allocation2 + $0x58] sm:$0xff] }
 0x10d   : > { %v1117_v44 = vld [vmem:[#allocation2 + $0x28] sm:$0xff]  ;;  %v545_v59 = vrot.slane %v461_v16, 1  ;;  %v3523_v28 = vpop.f32.mrf.mxu0  ;;  %v752_v5 = vsel %vm733_vm4, %v749_v62, %v751_v21 }
 0x10e   : > { %v1209_v25 = vadd.f32 %v1161_v10, %v1117_v44  ;;  %1021 = vst.msk [vmem:[#allocation2 + $0x30] sm:$0xff] %vm390_vm2, %v1003_v3 }
 0x10f   : > { %v546_v42 = vsel %vm525_vm3, %v543_v27, %v545_v59  ;;  %2811 = vmatmul.msk.f32.gmra.mxu1 %vm255_vm1, %v3219_v35  ;;  %2832 = vmatmul.msk.f32.gmra.mxu2 %vm255_vm1, %v1454_v7 }
 0x110   : > { %1227 = vst.msk [vmem:[#allocation2 + $0x28] sm:$0xff] %vm390_vm2, %v1209_v25  ;;  %v590_v30 = vadd.f32 %v546_v42, %v497_v40  ;;  %2854 = vmatmul.msk.f32.gmra.mxu3 %vm255_vm1, %v1455_v24  ;;  %2874 = vmatmul.msk.f32.gmra.mxu0 %vm255_vm1, %v1454_v7 }
 0x111   : > { %v704_v45 = vld [vmem:[#allocation2 + $0x40] sm:$0xff] }
 0x112   : > { %608 = vst.msk [vmem:[#allocation2 + $0x48] sm:$0xff] %vm390_vm2, %v590_v30  ;;  %v797_v47 = vadd.f32 %v752_v5, %v704_v45  ;;  %v669_v4 = vpop.f32.mrf.mxu2  ;;  %v1458_v5 = vld [vmem:[%s3065_s13 + $0x7c] sm:$0xff]  ;;  %v500_v45 = vld [vmem:[#allocation2 + $0x60] sm:$0xff] }
 0x113   : > { %v986_v48 = vld [vmem:[#allocation2 + $0x38] sm:$0xff]  ;;  %v753_v49 = vrot.slane %v669_v4, 2  ;;  %v3535_v35 = vpop.f32.mrf.mxu3 }
 0x114   : > { %815 = vst.msk [vmem:[#allocation2 + $0x40] sm:$0xff] %vm390_vm2, %v797_v47  ;;  %v1004_v52 = vadd.f32 %v986_v48, %v3459_v31  ;;  %v464_v53 = vpop.f32.mrf.mxu1  ;;  %v1168_v48 = vrot.slane %v3523_v28, 1 }
 0x115   : > { %v1118_v54 = vld [vmem:[#allocation2 + $0x30] sm:$0xff]  ;;  %v547_v20 = vrot.slane %v464_v53, 1  ;;  %v3542_v57 = vpop.f32.mrf.mxu0  ;;  %v754_v62 = vsel %vm733_vm4, %v751_v21, %v753_v49  ;;  %v1166_v21 = vrot.slane %v3504_v12, 1 }
 0x116   : > { %v1210_v23 = vadd.f32 %v1163_v60, %v1118_v54  ;;  %1022 = vst.msk [vmem:[#allocation2 + $0x38] sm:$0xff] %vm390_vm2, %v1004_v52 }
 0x117   : > { %v548_v26 = vsel %vm525_vm3, %v545_v59, %v547_v20  ;;  %2812 = vmatmul.msk.f32.gmra.mxu1 %vm255_vm1, %v3230_v36  ;;  %2833 = vmatmul.msk.f32.gmra.mxu2 %vm255_vm1, %v1455_v24  ;;  %v1167_v42 = vsel %vm525_vm3, %v1164_v63, %v1166_v21  ;;  %v501_v63 = vld [vmem:[#allocation2 + $0x68] sm:$0xff] }
 0x118   : > { %1228 = vst.msk [vmem:[#allocation2 + $0x30] sm:$0xff] %vm390_vm2, %v1210_v23  ;;  %v591_v31 = vadd.f32 %v548_v26, %v498_v58  ;;  %2855 = vmatmul.msk.f32.gmra.mxu3 %vm255_vm1, %v1456_v55  ;;  %2875 = vmatmul.msk.f32.gmra.mxu0 %vm255_vm1, %v1455_v24  ;;  %v1169_v58 = vsel %vm525_vm3, %v1166_v21, %v1168_v48  ;;  %v1459_v26 = vld [vmem:[%s3065_s13 + $0x84] sm:$0xff] }
 0x119   : > { %v705_v18 = vld [vmem:[#allocation2 + $0x48] sm:$0xff] }
 0x11a   : > { %609 = vst.msk [vmem:[#allocation2 + $0x50] sm:$0xff] %vm390_vm2, %v591_v31  ;;  %v798_v1 = vadd.f32 %v754_v62, %v705_v18  ;;  %v672_v6 = vpop.f32.mrf.mxu2 }
 0x11b   : > { %v987_v27 = vld [vmem:[#allocation2 + $0x40] sm:$0xff]  ;;  %v755_v7 = vrot.slane %v672_v6, 2  ;;  %v3554_v36 = vpop.f32.mrf.mxu3  ;;  %v1170_v6 = vrot.slane %v3542_v57, 1 }
 0x11c   : > { %816 = vst.msk [vmem:[#allocation2 + $0x48] sm:$0xff] %vm390_vm2, %v798_v1  ;;  %v1005_v8 = vadd.f32 %v987_v27, %v3478_v32  ;;  %v467_v0 = vpop.f32.mrf.mxu1 }
 0x11d   : > { %v1119_v11 = vld [vmem:[#allocation2 + $0x38] sm:$0xff]  ;;  %v549_v50 = vrot.slane %v467_v0, 1  ;;  %v3561_v15 = vpop.f32.mrf.mxu0  ;;  %v756_v19 = vsel %vm733_vm4, %v753_v49, %v755_v7 }
 0x11e   : > { %v1211_v14 = vadd.f32 %v1165_v13, %v1119_v11  ;;  %1023 = vst.msk [vmem:[#allocation2 + $0x40] sm:$0xff] %vm390_vm2, %v1005_v8 }
 0x11f   : > { %v550_v17 = vsel %vm525_vm3, %v547_v20, %v549_v50  ;;  %2813 = vmatmul.msk.f32.gmra.mxu1 %vm255_vm1, %v3241_v37  ;;  %2834 = vmatmul.msk.f32.gmra.mxu2 %vm255_vm1, %v1456_v55 }
 0x120   : > { %1229 = vst.msk [vmem:[#allocation2 + $0x38] sm:$0xff] %vm390_vm2, %v1211_v14  ;;  %v592_v32 = vadd.f32 %v550_v17, %v499_v22  ;;  %2856 = vmatmul.msk.f32.gmra.mxu3 %vm255_vm1, %v1457_v29  ;;  %2876 = vmatmul.msk.f32.gmra.mxu0 %vm255_vm1, %v1456_v55  ;;  %v1171_v14 = vsel %vm525_vm3, %v1168_v48, %v1170_v6  ;;  %v1460_v22 = vld [vmem:[%s3065_s13 + $0x8c] sm:$0xff] }
 0x121   : > { %v706_v3 = vld [vmem:[#allocation2 + $0x50] sm:$0xff] }
 0x122   : > { %610 = vst.msk [vmem:[#allocation2 + $0x58] sm:$0xff] %vm390_vm2, %v592_v32  ;;  %v799_v16 = vadd.f32 %v756_v19, %v706_v3  ;;  %v675_v44 = vpop.f32.mrf.mxu2  ;;  %v502_v32 = vld [vmem:[#allocation2 + $0x70] sm:$0xff] }
 0x123   : > { %v988_v10 = vld [vmem:[#allocation2 + $0x48] sm:$0xff]  ;;  %v757_v59 = vrot.slane %v675_v44, 2  ;;  %v3573_v37 = vpop.f32.mrf.mxu3 }
 0x124   : > { %817 = vst.msk [vmem:[#allocation2 + $0x50] sm:$0xff] %vm390_vm2, %v799_v16  ;;  %v1006_v24 = vadd.f32 %v988_v10, %v3497_v33  ;;  %v470_v25 = vpop.f32.mrf.mxu1  ;;  %v1172_v16 = vrot.slane %v3561_v15, 1 }
 0x125   : > { %v1120_v40 = vld [vmem:[#allocation2 + $0x40] sm:$0xff]  ;;  %v551_v12 = vrot.slane %v470_v25, 1  ;;  %v3580_v43 = vpop.f32.mrf.mxu0  ;;  %v758_v4 = vsel %vm733_vm4, %v755_v7, %v757_v59 }
 0x126   : > { %v1212_v30 = vadd.f32 %v1167_v42, %v1120_v40  ;;  %1024 = vst.msk [vmem:[#allocation2 + $0x48] sm:$0xff] %vm390_vm2, %v1006_v24 }
 0x127   : > { %v552_v47 = vsel %vm525_vm3, %v549_v50, %v551_v12  ;;  %2814 = vmatmul.msk.f32.gmra.mxu1 %vm255_vm1, %v3250_v38  ;;  %2835 = vmatmul.msk.f32.gmra.mxu2 %vm255_vm1, %v1457_v29 }
 0x128   : > { %1230 = vst.msk [vmem:[#allocation2 + $0x40] sm:$0xff] %vm390_vm2, %v1212_v30  ;;  %v593_v33 = vadd.f32 %v552_v47, %v500_v45  ;;  %2857 = vmatmul.msk.f32.gmra.mxu3 %vm255_vm1, %v1458_v5  ;;  %2877 = vmatmul.msk.f32.gmra.mxu0 %vm255_vm1, %v1457_v29  ;;  %v1461_v30 = vld [vmem:[%s3065_s13 + $0x94] sm:$0xff] }
 0x129   : > { %v707_v49 = vld [vmem:[#allocation2 + $0x58] sm:$0xff] }
 0x12a   : > { %611 = vst.msk [vmem:[#allocation2 + $0x60] sm:$0xff] %vm390_vm2, %v593_v33  ;;  %v800_v52 = vadd.f32 %v758_v4, %v707_v49  ;;  %v678_v53 = vpop.f32.mrf.mxu2  ;;  %v503_v4 = vld [vmem:[#allocation2 + $0x78] sm:$0xff]  ;;  %v1174_v49 = vrot.slane %v3580_v43, 1 }
 0x12b   : > { %v989_v54 = vld [vmem:[#allocation2 + $0x50] sm:$0xff]  ;;  %v759_v60 = vrot.slane %v678_v53, 2  ;;  %v3592_v38 = vpop.f32.mrf.mxu3 }
 0x12c   : > { %818 = vst.msk [vmem:[#allocation2 + $0x58] sm:$0xff] %vm390_vm2, %v800_v52  ;;  %v1007_v20 = vadd.f32 %v989_v54, %v3516_v34  ;;  %v473_v55 = vpop.f32.mrf.mxu1 }
 0x12d   : > { %v1121_v23 = vld [vmem:[#allocation2 + $0x48] sm:$0xff]  ;;  %v553_v28 = vrot.slane %v473_v55, 1  ;;  %v3599_v31 = vpop.f32.mrf.mxu0  ;;  %v760_v1 = vsel %vm733_vm4, %v757_v59, %v759_v60 }
 0x12e   : > { %v1213_v62 = vadd.f32 %v1169_v58, %v1121_v23  ;;  %1025 = vst.msk [vmem:[#allocation2 + $0x50] sm:$0xff] %vm390_vm2, %v1007_v20 }
 0x12f   : > { %v554_v18 = vsel %vm525_vm3, %v551_v12, %v553_v28  ;;  %2815 = vmatmul.msk.f32.gmra.mxu1 %vm255_vm1, %v3259_v39  ;;  %2836 = vmatmul.msk.f32.gmra.mxu2 %vm255_vm1, %v1458_v5 }
 0x130   : > { %1231 = vst.msk [vmem:[#allocation2 + $0x48] sm:$0xff] %vm390_vm2, %v1213_v62  ;;  %v594_v34 = vadd.f32 %v554_v18, %v501_v63  ;;  %2858 = vmatmul.msk.f32.gmra.mxu3 %vm255_vm1, %v1459_v26  ;;  %2878 = vmatmul.msk.f32.gmra.mxu0 %vm255_vm1, %v1458_v5  ;;  %v1173_v5 = vsel %vm525_vm3, %v1170_v6, %v1172_v16  ;;  %v504_v18 = vld [vmem:[#allocation2 + $0x80] sm:$0xff]  ;;  %v1176_v6 = vrot.slane %v3599_v31, 1 }
 0x131   : > { %v708_v27 = vld [vmem:[#allocation2 + $0x60] sm:$0xff] }
 0x132   : > { %612 = vst.msk [vmem:[#allocation2 + $0x68] sm:$0xff] %vm390_vm2, %v594_v34  ;;  %v801_v7 = vadd.f32 %v760_v1, %v708_v27  ;;  %v681_v8 = vpop.f32.mrf.mxu2  ;;  %v1463_v31 = vld [vmem:[%s3065_s13 + $0xa4] sm:$0xff] }
 0x133   : > { %v990_v0 = vld [vmem:[#allocation2 + $0x58] sm:$0xff]  ;;  %v761_v11 = vrot.slane %v681_v8, 2  ;;  %v3611_v39 = vpop.f32.mrf.mxu3 }
 0x134   : > { %819 = vst.msk [vmem:[#allocation2 + $0x60] sm:$0xff] %vm390_vm2, %v801_v7  ;;  %v1008_v13 = vadd.f32 %v990_v0, %v3535_v35  ;;  %v476_v50 = vpop.f32.mrf.mxu1 }
 0x135   : > { %v1122_v29 = vld [vmem:[#allocation2 + $0x50] sm:$0xff]  ;;  %v555_v57 = vrot.slane %v476_v50, 1  ;;  %v3618_v19 = vpop.f32.mrf.mxu0  ;;  %v762_v3 = vsel %vm733_vm4, %v759_v60, %v761_v11 }
 0x136   : > { %v1214_v17 = vadd.f32 %v1171_v14, %v1122_v29  ;;  %1026 = vst.msk [vmem:[#allocation2 + $0x58] sm:$0xff] %vm390_vm2, %v1008_v13  ;;  %v1177_v14 = vsel %vm525_vm3, %v1174_v49, %v1176_v6 }
 0x137   : > { %v556_v21 = vsel %vm525_vm3, %v553_v28, %v555_v57  ;;  %2816 = vmatmul.msk.f32.gmra.mxu1 %vm255_vm1, %v3271_v41  ;;  %2837 = vmatmul.msk.f32.gmra.mxu2 %vm255_vm1, %v1459_v26  ;;  %v1175_v28 = vsel %vm525_vm3, %v1172_v16, %v1174_v49 }
 0x138   : > { %1232 = vst.msk [vmem:[#allocation2 + $0x50] sm:$0xff] %vm390_vm2, %v1214_v17  ;;  %v595_v35 = vadd.f32 %v556_v21, %v502_v32  ;;  %2859 = vmatmul.msk.f32.gmra.mxu3 %vm255_vm1, %v1460_v22  ;;  %2879 = vmatmul.msk.f32.gmra.mxu0 %vm255_vm1, %v1459_v26  ;;  %v1462_v26 = vld [vmem:[%s3065_s13 + $0x9c] sm:$0xff]  ;;  %v505_v32 = vld [vmem:[#allocation2 + $0x88] sm:$0xff] }
 0x139   : > { %v709_v44 = vld [vmem:[#allocation2 + $0x68] sm:$0xff] }
 0x13a   : > { %613 = vst.msk [vmem:[#allocation2 + $0x70] sm:$0xff] %vm390_vm2, %v595_v35  ;;  %v802_v10 = vadd.f32 %v762_v3, %v709_v44  ;;  %v684_v59 = vpop.f32.mrf.mxu2  ;;  %v1178_v35 = vrot.slane %v3618_v19, 1  ;;  %v1464_v19 = vld [vmem:[%s3065_s13 + $0xac] sm:$0xff] }
 0x13b   : > { %v991_v24 = vld [vmem:[#allocation2 + $0x60] sm:$0xff]  ;;  %v763_v25 = vrot.slane %v684_v59, 2  ;;  %v3630_v41 = vpop.f32.mrf.mxu3 }
 0x13c   : > { %820 = vst.msk [vmem:[#allocation2 + $0x68] sm:$0xff] %vm390_vm2, %v802_v10  ;;  %v1009_v40 = vadd.f32 %v991_v24, %v3554_v36  ;;  %v479_v42 = vpop.f32.mrf.mxu1 }
 0x13d   : > { %v1123_v12 = vld [vmem:[#allocation2 + $0x58] sm:$0xff]  ;;  %v557_v15 = vrot.slane %v479_v42, 1  ;;  %v3637_v47 = vpop.f32.mrf.mxu0  ;;  %v764_v48 = vsel %vm733_vm4, %v761_v11, %v763_v25 }
 0x13e   : > { %v1215_v45 = vadd.f32 %v1173_v5, %v1123_v12  ;;  %1027 = vst.msk [vmem:[#allocation2 + $0x60] sm:$0xff] %vm390_vm2, %v1009_v40  ;;  %v1179_v12 = vsel %vm525_vm3, %v1176_v6, %v1178_v35 }
 0x13f   : > { %v558_v33 = vsel %vm525_vm3, %v555_v57, %v557_v15  ;;  %2817 = vmatmul.msk.f32.gmra.mxu1 %vm255_vm1, %v3286_v46  ;;  %2838 = vmatmul.msk.f32.gmra.mxu2 %vm255_vm1, %v1460_v22 }
 0x140   : > { %1233 = vst.msk [vmem:[#allocation2 + $0x58] sm:$0xff] %vm390_vm2, %v1215_v45  ;;  %v596_v36 = vadd.f32 %v558_v33, %v503_v4  ;;  %2860 = vmatmul.msk.f32.gmra.mxu3 %vm255_vm1, %v1461_v30  ;;  %2880 = vmatmul.msk.f32.gmra.mxu0 %vm255_vm1, %v1460_v22 }
 0x141   : > { %v710_v52 = vld [vmem:[#allocation2 + $0x70] sm:$0xff] }
 0x142   : > { %614 = vst.msk [vmem:[#allocation2 + $0x78] sm:$0xff] %vm390_vm2, %v596_v36  ;;  %v803_v53 = vadd.f32 %v764_v48, %v710_v52  ;;  %v687_v54 = vpop.f32.mrf.mxu2 }
 0x143   : > { %v992_v60 = vld [vmem:[#allocation2 + $0x68] sm:$0xff]  ;;  %v765_v20 = vrot.slane %v687_v54, 2  ;;  %v3649_v46 = vpop.f32.mrf.mxu3 }
 0x144   : > { %821 = vst.msk [vmem:[#allocation2 + $0x70] sm:$0xff] %vm390_vm2, %v803_v53  ;;  %v1010_v55 = vadd.f32 %v992_v60, %v3573_v37  ;;  %v482_v23 = vpop.f32.mrf.mxu1 }
 0x145   : > { %v1124_v58 = vld [vmem:[#allocation2 + $0x60] sm:$0xff]  ;;  %v559_v43 = vrot.slane %v482_v23, 1  ;;  %v3656_v63 = vpop.f32.mrf.mxu0  ;;  %v766_v34 = vsel %vm733_vm4, %v763_v25, %v765_v20 }
 0x146   : > { %v1216_v62 = vadd.f32 %v1175_v28, %v1124_v58  ;;  %1028 = vst.msk [vmem:[#allocation2 + $0x68] sm:$0xff] %vm390_vm2, %v1010_v55  ;;  %v1319_v55 = vld [vmem:[#allocation2] sm:$0xff]  ;;  %v1182_v58 = vrot.slane %v3656_v63, 1  ;;  %v1320_v63 = vld [vmem:[#allocation2 + $0x8] sm:$0xff] }
 0x147   : > { %v560_v1 = vsel %vm525_vm3, %v557_v15, %v559_v43  ;;  %2818 = vmatmul.msk.f32.gmra.mxu1 %vm255_vm1, %v3301_v51  ;;  %2839 = vmatmul.msk.f32.gmra.mxu2 %vm255_vm1, %v1461_v30 }
 0x148   : > { %1234 = vst.msk [vmem:[#allocation2 + $0x60] sm:$0xff] %vm390_vm2, %v1216_v62  ;;  %v597_v37 = vadd.f32 %v560_v1, %v504_v18  ;;  %2861 = vmatmul.msk.f32.gmra.mxu3 %vm255_vm1, %v1462_v26  ;;  %2881 = vmatmul.msk.f32.gmra.mxu0 %vm255_vm1, %v1461_v30 }
 0x149   : > { %v711_v27 = vld [vmem:[#allocation2 + $0x78] sm:$0xff] }
 0x14a   : > { %615 = vst.msk [vmem:[#allocation2 + $0x80] sm:$0xff] %vm390_vm2, %v597_v37  ;;  %v804_v7 = vadd.f32 %v766_v34, %v711_v27  ;;  %v690_v8 = vpop.f32.mrf.mxu2 }
 0x14b   : > { %v993_v0 = vld [vmem:[#allocation2 + $0x70] sm:$0xff]  ;;  %v767_v11 = vrot.slane %v690_v8, 2  ;;  %v977_v51 = vpop.f32.mrf.mxu3 }
 0x14c   : > { %822 = vst.msk [vmem:[#allocation2 + $0x78] sm:$0xff] %vm390_vm2, %v804_v7  ;;  %v1011_v13 = vadd.f32 %v993_v0, %v3592_v38  ;;  %v485_v50 = vpop.f32.mrf.mxu1 }
 0x14d   : > { %v1125_v29 = vld [vmem:[#allocation2 + $0x68] sm:$0xff]  ;;  %v561_v57 = vrot.slane %v485_v50, 1  ;;  %v3673_v17 = vpop.f32.mrf.mxu0  ;;  %v768_v3 = vsel %vm733_vm4, %v765_v20, %v767_v11 }
 0x14e   : > { %v1217_v22 = vadd.f32 %v1177_v14, %v1125_v29  ;;  %1029 = vst.msk [vmem:[#allocation2 + $0x70] sm:$0xff] %vm390_vm2, %v1011_v13  ;;  %v1465_v20 = vld [vmem:[%s3065_s13 + $0xb4] sm:$0x3] }
 0x14f   : > { %v562_v21 = vsel %vm525_vm3, %v559_v43, %v561_v57  ;;  %2819 = vmatmul.msk.f32.gmra.mxu1 %vm255_vm1, %v3316_v56  ;;  %2840 = vmatmul.msk.f32.gmra.mxu2 %vm255_vm1, %v1462_v26 }
 0x150   : > { %1235 = vst.msk [vmem:[#allocation2 + $0x68] sm:$0xff] %vm390_vm2, %v1217_v22  ;;  %v598_v38 = vadd.f32 %v562_v21, %v505_v32  ;;  %2862 = vmatmul.msk.f32.gmra.mxu3 %vm255_vm1, %v1463_v31  ;;  %2882 = vmatmul.msk.f32.gmra.mxu0 %vm255_vm1, %v1462_v26 }
 0x151   : > { %v712_v16 = vld [vmem:[#allocation2 + $0x80] sm:$0xff] }
 0x152   : > { %616 = vst.msk [vmem:[#allocation2 + $0x88] sm:$0xff] %vm390_vm2, %v598_v38  ;;  %v805_v44 = vadd.f32 %v768_v3, %v712_v16  ;;  %v693_v10 = vpop.f32.mrf.mxu2 }
 0x153   : > { %v994_v59 = vld [vmem:[#allocation2 + $0x78] sm:$0xff]  ;;  %v769_v24 = vrot.slane %v693_v10, 2  ;;  %v3685_v56 = vpop.f32.mrf.mxu3 }
 0x154   : > { %823 = vst.msk [vmem:[#allocation2 + $0x80] sm:$0xff] %vm390_vm2, %v805_v44  ;;  %v1012_v25 = vadd.f32 %v994_v59, %v3611_v39  ;;  %v1262_v40 = vpop.f32.mrf.mxu1  ;;  %v1180_v39 = vrot.slane %v3637_v47, 1 }
 0x155   : > { %v1126_v42 = vld [vmem:[#allocation2 + $0x70] sm:$0xff]  ;;  %v770_v15 = vsel %vm733_vm4, %v767_v11, %v769_v24  ;;  %v3696_v30 = vpop.f32.mrf.mxu0  ;;  %v1356_v54 = vrot.slane %v1262_v40, 2 }
 0x156   : > { %v1218_v5 = vadd.f32 %v1179_v12, %v1126_v42  ;;  %1030 = vst.msk [vmem:[#allocation2 + $0x78] sm:$0xff] %vm390_vm2, %v1012_v25  ;;  %v1181_v53 = vsel %vm525_vm3, %v1178_v35, %v1180_v39  ;;  %v1183_v34 = vsel %vm525_vm3, %v1180_v39, %v1182_v58  ;;  %v1322_v42 = vld [vmem:[#allocation2 + $0x18] sm:$0xff] }
 0x157   : > { %2820 = vmatmul.msk.f32.gmra.mxu1 %vm255_vm1, %v3330_v61  ;;  %2841 = vmatmul.msk.f32.gmra.mxu2 %vm255_vm1, %v1463_v31 }
 0x158   : > { %1236 = vst.msk [vmem:[#allocation2 + $0x70] sm:$0xff] %vm390_vm2, %v1218_v5  ;;  %2863 = vmatmul.msk.f32.gmra.mxu3 %vm255_vm1, %v1464_v19  ;;  %2883 = vmatmul.msk.f32.gmra.mxu0 %vm255_vm1, %v1463_v31  ;;  %v1771_v31 = vrot.slane %v3685_v56, 1  ;;  %v1978_v5 = vrot.slane %v3696_v30, 2 }
 0x159   : > { %v713_v45 = vld [vmem:[#allocation2 + $0x88] sm:$0xff] }
 0x15a   : > { %v806_v4 = vadd.f32 %v770_v15, %v713_v45  ;;  %v1545_v33 = vpop.f32.mrf.mxu2 }
 0x15b   : > { %v995_v48 = vld [vmem:[#allocation2 + $0x80] sm:$0xff]  ;;  %v3702_v36 = vpop.f32.mrf.mxu3 }
 0x15c   : > { %824 = vst.msk [vmem:[#allocation2 + $0x88] sm:$0xff] %vm390_vm2, %v806_v4  ;;  %v1013_v61 = vadd.f32 %v995_v48, %v3630_v41  ;;  %v1265_v49 = vpop.f32.mrf.mxu1  ;;  %v1772_v22 = vrot.slane %v3702_v36, 1 }
 0x15d   : > { %v1127_v52 = vld [vmem:[#allocation2 + $0x78] sm:$0xff]  ;;  %v1357_v60 = vrot.slane %v1265_v49, 2  ;;  %v3716_v28 = vpop.f32.mrf.mxu0 }
 0x15e   : > { %v1219_v47 = vadd.f32 %v1181_v53, %v1127_v52  ;;  %1031 = vst.msk [vmem:[#allocation2 + $0x80] sm:$0xff] %vm390_vm2, %v1013_v61  ;;  %v1773_v16 = vsel %vm525_vm3, %v1771_v31, %v1772_v22  ;;  %v1979_v15 = vrot.slane %v3716_v28, 2 }
 0x15f   : > { %v1358_v23 = vsel %vm733_vm4, %v1356_v54, %v1357_v60  ;;  %2821 = vmatmul.msk.f32.gmra.mxu1 %vm255_vm1, %v3345_v2  ;;  %2842 = vmatmul.msk.f32.gmra.mxu2 %vm255_vm1, %v1464_v19 }
 0x160   : > { %1237 = vst.msk [vmem:[#allocation2 + $0x78] sm:$0xff] %vm390_vm2, %v1219_v47  ;;  %v1411_v41 = vadd.f32 %v1358_v23, %v1319_v55  ;;  %2864 = vmatmul.msk.f32.gmra.mxu3 %vm255_vm1, %v1465_v20  ;;  %2884 = vmatmul.msk.f32.gmra.mxu0 %vm255_vm1, %v1464_v19  ;;  %v1980_v52 = vsel %vm733_vm4, %v1978_v5, %v1979_v15 }
 0x162   : > { %1429 = vst.msk [vmem:[#allocation2] sm:$0xff] %vm390_vm2, %v1411_v41  ;;  %v1548_v43 = vpop.f32.mrf.mxu2  ;;  %v3772_v41 = vld [vmem:[%s4302_s2] ss:$0 sm:$0xff] }
 0x163   : > { %v996_v26 = vld [vmem:[#allocation2 + $0x88] sm:$0xff]  ;;  %v3720_v62 = vpop.f32.mrf.mxu3 }
 0x164   : > { %v1014_v2 = vadd.f32 %v996_v26, %v3649_v46  ;;  %v1268_v18 = vpop.f32.mrf.mxu1  ;;  %v1184_v46 = vrot.slane %v3673_v17, 1  ;;  %v1321_v17 = vld [vmem:[#allocation2 + $0x10] sm:$0xff]  ;;  %v1774_v40 = vrot.slane %v3720_v62, 1 }
 0x165   : > { %v1128_v1 = vld [vmem:[#allocation2 + $0x80] sm:$0xff]  ;;  %v1359_v37 = vrot.slane %v1268_v18, 2  ;;  %v3735_v13 = vpop.f32.mrf.mxu0 }
 0x166   : > { %v1220_v6 = vadd.f32 %v1183_v34, %v1128_v1  ;;  %1032 = vst.msk [vmem:[#allocation2 + $0x88] sm:$0xff] %vm390_vm2, %v1014_v2  ;;  %v1185_v29 = vsel %vm525_vm3, %v1182_v58, %v1184_v46  ;;  %v1981_v58 = vrot.slane %v3735_v13, 2  ;;  %v3793_v46 = vrot.slane %v3772_v41, 6 }
 0x167   : > { %v1360_v27 = vsel %vm733_vm4, %v1357_v60, %v1359_v37  ;;  %2822 = vmatmul.msk.f32.gmra.mxu1 %vm255_vm1, %v3360_v9  ;;  %2843 = vmatmul.msk.f32.gmra.mxu2 %vm255_vm1, %v1465_v20 }
 0x168   : > { %1238 = vst.msk [vmem:[#allocation2 + $0x80] sm:$0xff] %vm390_vm2, %v1220_v6  ;;  %v1412_v7 = vadd.f32 %v1360_v27, %v1320_v63  ;;  %2885 = vmatmul.msk.f32.gmra.mxu0 %vm255_vm1, %v1465_v20  ;;  %v1323_v20 = vld [vmem:[#allocation2 + $0x20] sm:$0xff]  ;;  %v1982_v63 = vsel %vm733_vm4, %v1979_v15, %v1981_v58 }
 0x169   : > { %v1601_v8 = vld [vmem:[#allocation2] sm:$0xff] }
 0x16a   : > { %1430 = vst.msk [vmem:[#allocation2 + $0x8] sm:$0xff] %vm390_vm2, %v1412_v7  ;;  %v1619_v0 = vadd.f32 %v1601_v8, %v1545_v33  ;;  %v1551_v11 = vpop.f32.mrf.mxu2  ;;  %v1775_v33 = vsel %vm525_vm3, %v1772_v22, %v1774_v40  ;;  %v3790_v7 = vrot.slane %v3772_v41, 4  ;;  %v1324_v22 = vld [vmem:[#allocation2 + $0x28] sm:$0xff] }
 0x16b   : > { %v3733_v51 = vpop.f32.mrf.mxu3 }
 0x16c   : > { %1637 = vst.msk [vmem:[#allocation2] sm:$0xff] %vm390_vm2, %v1619_v0  ;;  %v1271_v9 = vpop.f32.mrf.mxu1  ;;  %v1776_v60 = vrot.slane %v3733_v51, 1 }
 0x16d   : > { %v1129_v50 = vld [vmem:[#allocation2 + $0x88] sm:$0xff]  ;;  %v1361_v14 = vrot.slane %v1271_v9, 2  ;;  %v3748_v25 = vpop.f32.mrf.mxu0 }
 0x16e   : > { %v1221_v57 = vadd.f32 %v1185_v29, %v1129_v50  ;;  %v1777_v2 = vsel %vm525_vm3, %v1774_v40, %v1776_v60 }
 0x16f   : > { %v1362_v32 = vsel %vm733_vm4, %v1359_v37, %v1361_v14  ;;  %v3786_v37 = vrot.slane %v3772_v41, 2 }
 0x170   : > { %1239 = vst.msk [vmem:[#allocation2 + $0x88] sm:$0xff] %vm390_vm2, %v1221_v57  ;;  %v1413_v21 = vadd.f32 %v1362_v32, %v1321_v17  ;;  %v1983_v32 = vrot.slane %v3748_v25, 2 }
 0x171   : > { %v1602_v3 = vld [vmem:[#allocation2 + $0x8] sm:$0xff] }
 0x172   : > { %1431 = vst.msk [vmem:[#allocation2 + $0x10] sm:$0xff] %vm390_vm2, %v1413_v21  ;;  %v1620_v38 = vadd.f32 %v1602_v3, %v1548_v43  ;;  %v1554_v35 = vpop.f32.mrf.mxu2  ;;  %v3778_v43 = vld [vmem:[%s4303_s3] ss:$0 sm:$0xff] }
 0x173   : > { %v1734_v44 = vld [vmem:[#allocation2] sm:$0xff]  ;;  %v3746_v24 = vpop.f32.mrf.mxu3  ;;  %v3796_v8 = vrot.slane %v3778_v43, 2  ;;  %v3800_v51 = vrot.slane %v3778_v43, 4  ;;  %v3803_v13 = vrot.slane %v3778_v43, 6 }
 0x174   : > { %v1826_v10 = vadd.f32 %v1773_v16, %v1734_v44  ;;  %1638 = vst.msk [vmem:[#allocation2 + $0x8] sm:$0xff] %vm390_vm2, %v1620_v38  ;;  %v1274_v59 = vpop.f32.mrf.mxu1  ;;  %v1778_v9 = vrot.slane %v3746_v24, 1 }
 0x175   : > { %v1363_v56 = vrot.slane %v1274_v59, 2  ;;  %v3766_v55 = vpop.f32.mrf.mxu0 }
 0x176   : > { %1844 = vst.msk [vmem:[#allocation2] sm:$0xff] %vm390_vm2, %v1826_v10 }
 0x177   : > { %v1364_v12 = vsel %vm733_vm4, %v1361_v14, %v1363_v56 }
 0x178   : > { %v1414_v19 = vadd.f32 %v1364_v12, %v1322_v42 }
 0x179   : > { %v1603_v39 = vld [vmem:[#allocation2 + $0x10] sm:$0xff] }
 0x17a   : > { %1432 = vst.msk [vmem:[#allocation2 + $0x18] sm:$0xff] %vm390_vm2, %v1414_v19  ;;  %v1621_v45 = vadd.f32 %v1603_v39, %v1551_v11  ;;  %v3756_v4 = vpop.f32.mrf.mxu2 }
 0x17b   : > { %v1735_v48 = vld [vmem:[#allocation2 + $0x8] sm:$0xff]  ;;  %v3762_v54 = vpop.f32.mrf.mxu3 }
 0x17c   : > { %v1827_v36 = vadd.f32 %v1775_v33, %v1735_v48  ;;  %1639 = vst.msk [vmem:[#allocation2 + $0x10] sm:$0xff] %vm390_vm2, %v1621_v45  ;;  %v1277_v61 = vpop.f32.mrf.mxu1 }
 0x17d   : > { %v1941_v49 = vld [vmem:[#allocation2] sm:$0xff]  ;;  %v1365_v53 = vrot.slane %v1277_v61, 2  ;;  %v3813_v38 = vpop.f32.mrf.mxu0 }
 0x17e   : > { %1845 = vst.msk [vmem:[#allocation2 + $0x8] sm:$0xff] %vm390_vm2, %v1827_v36  ;;  %v2033_v30 = vadd.f32 %v1980_v52, %v1941_v49  ;;  %v1984_v49 = vsel %vm733_vm4, %v1981_v58, %v1983_v32  ;;  %v1325_v58 = vld [vmem:[#allocation2 + $0x30] sm:$0xff] }
 0x17f   : > { %v1366_v47 = vsel %vm733_vm4, %v1363_v56, %v1365_v53  ;;  %v1779_v56 = vsel %vm525_vm3, %v1776_v60, %v1778_v9 }
 0x180   : > { %2051 = vst.msk [vmem:[#allocation2] sm:$0xff] %vm390_vm2, %v2033_v30  ;;  %v1415_v23 = vadd.f32 %v1366_v47, %v1323_v20  ;;  %v1780_v30 = vrot.slane %v3762_v54, 1 }
 0x181   : > { %v1604_v28 = vld [vmem:[#allocation2 + $0x18] sm:$0xff] }
 0x182   : > { %1433 = vst.msk [vmem:[#allocation2 + $0x20] sm:$0xff] %vm390_vm2, %v1415_v23  ;;  %v1622_v26 = vadd.f32 %v1604_v28, %v1554_v35  ;;  %v3781_v62 = vpop.f32.mrf.mxu2 }
 0x183   : > { %v1736_v18 = vld [vmem:[#allocation2 + $0x10] sm:$0xff]  ;;  %v3809_v17 = vpop.f32.mrf.mxu3 }
 0x184   : > { %v1828_v1 = vadd.f32 %v1777_v2, %v1736_v18  ;;  %1640 = vst.msk [vmem:[#allocation2 + $0x18] sm:$0xff] %vm390_vm2, %v1622_v26  ;;  %v1280_v34 = vpop.f32.mrf.mxu1  ;;  %v1985_v26 = vrot.slane %v3766_v55, 2 }
 0x185   : > { %v1942_v6 = vld [vmem:[#allocation2 + $0x8] sm:$0xff]  ;;  %v1367_v27 = vrot.slane %v1280_v34, 2 }
 0x186   : > { %1846 = vst.msk [vmem:[#allocation2 + $0x10] sm:$0xff] %vm390_vm2, %v1828_v1  ;;  %v2034_v0 = vadd.f32 %v1982_v63, %v1942_v6 }
 0x187   : > { %v2069_v11 = vld [vmem:[#allocation2] sm:$0xff]  ;;  %v1368_v50 = vsel %vm733_vm4, %v1365_v53, %v1367_v27 }
 0x188   : > { %v2105_v29 = vrot.slane %v2069_v11, 2  ;;  %v2106_v14 = vrot.slane %v2069_v11, 4  ;;  %v2107_v57 = vrot.slane %v2069_v11, 6  ;;  %v2211_v31 = vmul.f32 %v3772_v41, %v2069_v11  ;;  %2052 = vst.msk [vmem:[#allocation2 + $0x8] sm:$0xff] %vm390_vm2, %v2034_v0 }
 0x189   : > { %v1416_v21 = vadd.f32 %v1368_v50, %v1324_v22  ;;  %v1605_v3 = vld [vmem:[#allocation2 + $0x20] sm:$0xff]  ;;  %v1781_v11 = vsel %vm525_vm3, %v1778_v9, %v1780_v30 }
 0x18a   : > { %v2212_v35 = vmul.f32 %v3786_v37, %v2105_v29  ;;  %v2213_v16 = vmul.f32 %v3790_v7, %v2106_v14  ;;  %v2214_v44 = vmul.f32 %v3793_v46, %v2107_v57  ;;  %v2285_v10 = vadd.f32 %v3778_v43, %v2211_v31  ;;  %v3819_v59 = vpop.f32.mrf.mxu2  ;;  %v3866_v29 = vpop.f32.mrf.mxu0 }
 0x18b   : > { %v1737_v40 = vld [vmem:[#allocation2 + $0x18] sm:$0xff]  ;;  %1434 = vst.msk [vmem:[#allocation2 + $0x28] sm:$0xff] %vm390_vm2, %v1416_v21  ;;  %v1623_v42 = vadd.f32 %v1605_v3, %v3756_v4 }
 0x18c   : > { %v2286_v12 = vadd.f32 %v3796_v8, %v2212_v35  ;;  %v2287_v19 = vadd.f32 %v3800_v51, %v2213_v16  ;;  %v2288_v5 = vadd.f32 %v3803_v13, %v2214_v44  ;;  %v2349_v15 = vmax.f32 %v2285_v10, 0.0  ;;  %v1283_v39 = vpop.f32.mrf.mxu1 }
 0x18d   : > { %v1829_v45 = vadd.f32 %v1779_v56, %v1737_v40  ;;  %v1943_v33 = vld [vmem:[#allocation2 + $0x10] sm:$0xff]  ;;  %1641 = vst.msk [vmem:[#allocation2 + $0x20] sm:$0xff] %vm390_vm2, %v1623_v42  ;;  %v1369_v4 = vrot.slane %v1283_v39, 2  ;;  %v1986_v10 = vsel %vm733_vm4, %v1983_v32, %v1985_v26  ;;  %v1326_v40 = vld [vmem:[#allocation2 + $0x38] sm:$0xff] }
 0x18e   : > { %v2350_v48 = vmax.f32 %v2286_v12, 0.0  ;;  %v2351_v36 = vmax.f32 %v2287_v19, 0.0  ;;  %v2352_v61 = vmax.f32 %v2288_v5, 0.0  ;;  %2477 = vst [vmem:[#allocation1] ss:$4 sm:$0xff] %v2349_v15  ;;  %v2035_v53 = vadd.f32 %v1984_v49, %v1943_v33 }
 0x18f   : > { %v2070_v52 = vld [vmem:[#allocation2 + $0x8] sm:$0xff]  ;;  %1847 = vst.msk [vmem:[#allocation2 + $0x18] sm:$0xff] %vm390_vm2, %v1829_v45  ;;  %v1370_v60 = vsel %vm733_vm4, %v1367_v27, %v1369_v4  ;;  %v3855_v27 = vpop.f32.mrf.mxu3  ;;  %v1782_v12 = vrot.slane %v3809_v17, 1  ;;  %v1987_v5 = vrot.slane %v3813_v38, 2 }
 0x190   : > { %2479 = vst [vmem:[#allocation1 + $0x1] ss:$4 sm:$0xff] %v2350_v48  ;;  %v2108_v20 = vrot.slane %v2070_v52, 2  ;;  %v2109_v47 = vrot.slane %v2070_v52, 4  ;;  %v2110_v23 = vrot.slane %v2070_v52, 6  ;;  %v2215_v28 = vmul.f32 %v3772_v41, %v2070_v52 }
 0x191   : > { %2481 = vst [vmem:[#allocation1 + $0x2] ss:$4 sm:$0xff] %v2351_v36  ;;  %v1417_v2 = vadd.f32 %v1370_v60, %v1325_v58  ;;  %v1783_v38 = vsel %vm525_vm3, %v1780_v30, %v1782_v12  ;;  %v1988_v30 = vsel %vm733_vm4, %v1985_v26, %v1987_v5  ;;  %v1327_v26 = vld [vmem:[#allocation2 + $0x40] sm:$0xff] }
 0x192   : > { %2483 = vst [vmem:[#allocation1 + $0x3] ss:$4 sm:$0xff] %v2352_v61  ;;  %v2216_v18 = vmul.f32 %v3786_v37, %v2108_v20  ;;  %v2217_v1 = vmul.f32 %v3790_v7, %v2109_v47  ;;  %v2218_v34 = vmul.f32 %v3793_v46, %v2110_v23  ;;  %v2289_v6 = vadd.f32 %v3778_v43, %v2215_v28  ;;  %v1606_v63 = vld [vmem:[#allocation2 + $0x28] sm:$0xff]  ;;  %v3857_v0 = vpop.f32.mrf.mxu2  ;;  %v3901_v20 = vpop.f32.mrf.mxu0 }
 0x193   : > { %2053 = vst.msk [vmem:[#allocation2 + $0x10] sm:$0xff] %vm390_vm2, %v2035_v53  ;;  %v1624_v50 = vadd.f32 %v1606_v63, %v3781_v62  ;;  %v1989_v63 = vrot.slane %v3866_v29, 2 }
 0x194   : > { %v2290_v14 = vadd.f32 %v3796_v8, %v2216_v18  ;;  %v2291_v57 = vadd.f32 %v3800_v51, %v2217_v1  ;;  %v2292_v31 = vadd.f32 %v3803_v13, %v2218_v34  ;;  %v2353_v22 = vmax.f32 %v2289_v6, 0.0  ;;  %v1738_v21 = vld [vmem:[#allocation2 + $0x20] sm:$0xff]  ;;  %1435 = vst.msk [vmem:[#allocation2 + $0x30] sm:$0xff] %vm390_vm2, %v1417_v2  ;;  %v1286_v3 = vpop.f32.mrf.mxu1 }
 0x195   : > { %v1830_v35 = vadd.f32 %v1781_v11, %v1738_v21  ;;  %1642 = vst.msk [vmem:[#allocation2 + $0x28] sm:$0xff] %vm390_vm2, %v1624_v50  ;;  %v1371_v24 = vrot.slane %v1286_v3, 2  ;;  %v1784_v2 = vrot.slane %v3855_v27, 1 }
 0x196   : > { %v2354_v9 = vmax.f32 %v2290_v14, 0.0  ;;  %v2355_v62 = vmax.f32 %v2291_v57, 0.0  ;;  %v2356_v16 = vmax.f32 %v2292_v31, 0.0  ;;  %2485 = vst [vmem:[#allocation1 + $0x20] ss:$4 sm:$0xff] %v2353_v22  ;;  %v1944_v44 = vld [vmem:[#allocation2 + $0x18] sm:$0xff] }
 0x197   : > { %1848 = vst.msk [vmem:[#allocation2 + $0x20] sm:$0xff] %vm390_vm2, %v1830_v35  ;;  %v2036_v56 = vadd.f32 %v1986_v10, %v1944_v44  ;;  %v1372_v42 = vsel %vm733_vm4, %v1369_v4, %v1371_v24  ;;  %v3896_v61 = vpop.f32.mrf.mxu3  ;;  %v1785_v3 = vsel %vm525_vm3, %v1782_v12, %v1784_v2 }
 0x198   : > { %2487 = vst [vmem:[#allocation1 + $0x21] ss:$4 sm:$0xff] %v2354_v9  ;;  %v1418_v19 = vadd.f32 %v1372_v42, %v1326_v40  ;;  %v1990_v42 = vsel %vm733_vm4, %v1987_v5, %v1989_v63  ;;  %v1328_v5 = vld [vmem:[#allocation2 + $0x48] sm:$0xff] }
 0x199   : > { %2489 = vst [vmem:[#allocation1 + $0x22] ss:$4 sm:$0xff] %v2355_v62  ;;  %v2492_v15 = vld.sshfl [vmem:[#allocation1] sm:$0xff pattern:$0x73625140] }
 0x19a   : > { %2491 = vst [vmem:[#allocation1 + $0x23] ss:$4 sm:$0xff] %v2356_v16  ;;  %v2071_v39 = vld [vmem:[#allocation2 + $0x10] sm:$0xff]  ;;  %v3883_v25 = vpop.f32.mrf.mxu2 }
 0x19b   : > { %v2111_v32 = vrot.slane %v2071_v39, 2  ;;  %v2112_v45 = vrot.slane %v2071_v39, 4  ;;  %v2113_v33 = vrot.slane %v2071_v39, 6  ;;  %2054 = vst.msk [vmem:[#allocation2 + $0x18] sm:$0xff] %vm390_vm2, %v2036_v56  ;;  %v1607_v17 = vld [vmem:[#allocation2 + $0x30] sm:$0xff] }
 0x19c   : > { %v1739_v4 = vld [vmem:[#allocation2 + $0x28] sm:$0xff]  ;;  %1436 = vst.msk [vmem:[#allocation2 + $0x38] sm:$0xff] %vm390_vm2, %v1418_v19  ;;  %v1625_v48 = vadd.f32 %v1607_v17, %v3819_v59  ;;  %v1289_v36 = vpop.f32.mrf.mxu1 }
 0x19d   : > { %v2219_v49 = vmul.f32 %v3772_v41, %v2111_v32  ;;  %v2220_v52 = vmul.f32 %v3786_v37, %v2112_v45  ;;  %v2221_v53 = vmul.f32 %v3790_v7, %v2113_v33  ;;  %v1831_v60 = vadd.f32 %v1783_v38, %v1739_v4  ;;  %2580 = vst.msk [vmem:[%s3888_s12] sm:$0xff] %vm390_vm2, %v2492_v15  ;;  %v3938_v45 = vpop.f32.mrf.mxu0 }
 0x19e   : > { %v1945_v54 = vld [vmem:[#allocation2 + $0x20] sm:$0xff]  ;;  %1643 = vst.msk [vmem:[#allocation2 + $0x30] sm:$0xff] %vm390_vm2, %v1625_v48  ;;  %v1373_v59 = vrot.slane %v1289_v36, 2 }
 0x19f   : > { %v2293_v47 = vadd.f32 %v3778_v43, %v2219_v49  ;;  %v2294_v23 = vadd.f32 %v3796_v8, %v2220_v52  ;;  %v2295_v28 = vadd.f32 %v3800_v51, %v2221_v53  ;;  %1849 = vst.msk [vmem:[#allocation2 + $0x28] sm:$0xff] %vm390_vm2, %v1831_v60  ;;  %v2037_v58 = vadd.f32 %v1988_v30, %v1945_v54  ;;  %v3932_v12 = vpop.f32.mrf.mxu3 }
 0x1a0   : > { %v1374_v18 = vsel %vm733_vm4, %v1371_v24, %v1373_v59 }
 0x1a1   : > { %v2357_v1 = vmax.f32 %v2293_v47, 0.0  ;;  %v2358_v55 = vmax.f32 %v2294_v23, 0.0  ;;  %v2359_v34 = vmax.f32 %v2295_v28, 0.0  ;;  %2055 = vst.msk [vmem:[#allocation2 + $0x20] sm:$0xff] %vm390_vm2, %v2037_v58  ;;  %v1419_v11 = vadd.f32 %v1374_v18, %v1327_v26 }
 0x1a2   : > { %v2072_v6 = vld [vmem:[#allocation2 + $0x18] sm:$0xff]  ;;  %v3917_v50 = vpop.f32.mrf.mxu2  ;;  %v1786_v47 = vrot.slane %v3896_v61, 1 }
 0x1a3   : > { %2494 = vst [vmem:[#allocation1] ss:$4 sm:$0xff] %v2357_v1  ;;  %v2114_v14 = vrot.slane %v2072_v6, 2  ;;  %v2115_v57 = vrot.slane %v2072_v6, 4  ;;  %v2116_v31 = vrot.slane %v2072_v6, 6  ;;  %v2222_v22 = vmul.f32 %v3793_v46, %v2072_v6  ;;  %v1608_v21 = vld [vmem:[#allocation2 + $0x38] sm:$0xff] }
 0x1a4   : > { %2495 = vst [vmem:[#allocation1 + $0x1] ss:$4 sm:$0xff] %v2358_v55  ;;  %v1626_v35 = vadd.f32 %v1608_v21, %v3857_v0  ;;  %v1292_v24 = vpop.f32.mrf.mxu1  ;;  %v2493_v49 = vld.sshfl [vmem:[#allocation1 + $0x20] sm:$0xff pattern:$0x73625140] }
 0x1a5   : > { %2496 = vst [vmem:[#allocation1 + $0x2] ss:$4 sm:$0xff] %v2359_v34  ;;  %v2223_v9 = vmul.f32 %v3772_v41, %v2114_v14  ;;  %v2224_v62 = vmul.f32 %v3786_v37, %v2115_v57  ;;  %v2225_v16 = vmul.f32 %v3790_v7, %v2116_v31  ;;  %v2296_v44 = vadd.f32 %v3803_v13, %v2222_v22  ;;  %v1740_v10 = vld [vmem:[#allocation2 + $0x30] sm:$0xff] }
 0x1a6   : > { %v1832_v56 = vadd.f32 %v1785_v3, %v1740_v10  ;;  %v1946_v40 = vld [vmem:[#allocation2 + $0x28] sm:$0xff]  ;;  %1437 = vst.msk [vmem:[#allocation2 + $0x40] sm:$0xff] %vm390_vm2, %v1419_v11  ;;  %v1375_v0 = vrot.slane %v1292_v24, 2  ;;  %v1787_v14 = vsel %vm525_vm3, %v1784_v2, %v1786_v47 }
 0x1a7   : > { %v2297_v19 = vadd.f32 %v3778_v43, %v2223_v9  ;;  %v2298_v15 = vadd.f32 %v3796_v8, %v2224_v62  ;;  %v2299_v39 = vadd.f32 %v3800_v51, %v2225_v16  ;;  %v2360_v32 = vmax.f32 %v2296_v44, 0.0  ;;  %1644 = vst.msk [vmem:[#allocation2 + $0x38] sm:$0xff] %vm390_vm2, %v1626_v35  ;;  %v3967_v35 = vpop.f32.mrf.mxu3  ;;  %v3969_v9 = vpop.f32.mrf.mxu0  ;;  %v1329_v44 = vld [vmem:[#allocation2 + $0x50] sm:$0xff] }
 0x1a8   : > { %1850 = vst.msk [vmem:[#allocation2 + $0x30] sm:$0xff] %vm390_vm2, %v1832_v56  ;;  %v2038_v33 = vadd.f32 %v1990_v42, %v1946_v40  ;;  %v1376_v17 = vsel %vm733_vm4, %v1373_v59, %v1375_v0  ;;  %v2073_v36 = vld [vmem:[#allocation2 + $0x20] sm:$0xff]  ;;  %v1991_v59 = vrot.slane %v3901_v20, 2  ;;  %v1788_v56 = vrot.slane %v3932_v12, 1 }
 0x1a9   : > { %v2361_v38 = vmax.f32 %v2297_v19, 0.0  ;;  %v2362_v4 = vmax.f32 %v2298_v15, 0.0  ;;  %v2363_v48 = vmax.f32 %v2299_v39, 0.0  ;;  %2497 = vst [vmem:[#allocation1 + $0x3] ss:$4 sm:$0xff] %v2360_v32  ;;  %v2117_v52 = vrot.slane %v2073_v36, 4 }
 0x1aa   : > { %v2118_v53 = vrot.slane %v2073_v36, 6  ;;  %v2226_v60 = vmul.f32 %v3793_v46, %v2073_v36  ;;  %2056 = vst.msk [vmem:[#allocation2 + $0x28] sm:$0xff] %vm390_vm2, %v2038_v33  ;;  %v1420_v54 = vadd.f32 %v1376_v17, %v1328_v5  ;;  %v3944_v30 = vpop.f32.mrf.mxu2  ;;  %v1992_v31 = vsel %vm733_vm4, %v1989_v63, %v1991_v59 }
 0x1ab   : > { %2498 = vst [vmem:[#allocation1 + $0x20] ss:$4 sm:$0xff] %v2361_v38  ;;  %v2227_v23 = vmul.f32 %v3772_v41, %v2117_v52 }
 0x1ac   : > { %2499 = vst [vmem:[#allocation1 + $0x21] ss:$4 sm:$0xff] %v2362_v4  ;;  %v2228_v28 = vmul.f32 %v3786_v37, %v2118_v53  ;;  %v2300_v58 = vadd.f32 %v3803_v13, %v2226_v60  ;;  %v1295_v18 = vpop.f32.mrf.mxu1  ;;  %v1789_v53 = vsel %vm525_vm3, %v1786_v47, %v1788_v56 }
 0x1ad   : > { %2500 = vst [vmem:[#allocation1 + $0x22] ss:$4 sm:$0xff] %v2363_v48  ;;  %v1609_v1 = vld [vmem:[#allocation2 + $0x40] sm:$0xff]  ;;  %v1377_v55 = vrot.slane %v1295_v18, 2  ;;  %v2301_v34 = vadd.f32 %v3778_v43, %v2227_v23  ;;  %v1993_v48 = vrot.slane %v3938_v45, 2 }
 0x1ae   : > { %v2302_v26 = vadd.f32 %v3796_v8, %v2228_v28  ;;  %v2364_v6 = vmax.f32 %v2300_v58, 0.0  ;;  %v1741_v61 = vld [vmem:[#allocation2 + $0x38] sm:$0xff]  ;;  %1438 = vst.msk [vmem:[#allocation2 + $0x48] sm:$0xff] %vm390_vm2, %v1420_v54  ;;  %v1627_v11 = vadd.f32 %v1609_v1, %v3883_v25 }
 0x1af   : > { %v1947_v57 = vld [vmem:[#allocation2 + $0x30] sm:$0xff]  ;;  %2581 = vst.msk [vmem:[%s3888_s12 + $0x8] sm:$0xff] %vm390_vm2, %v2493_v49  ;;  %v2365_v22 = vmax.f32 %v2301_v34, 0.0  ;;  %v1833_v3 = vadd.f32 %v1787_v14, %v1741_v61  ;;  %v1378_v25 = vsel %vm733_vm4, %v1375_v0, %v1377_v55  ;;  %v3992_v58 = vpop.f32.mrf.mxu3  ;;  %v1994_v18 = vsel %vm733_vm4, %v1991_v59, %v1993_v48  ;;  %v1330_v1 = vld [vmem:[#allocation2 + $0x58] sm:$0xff]  ;;  %v3997_v34 = vpop.f32.mrf.mxu0 }
 0x1b0   : > { %v2366_v21 = vmax.f32 %v2302_v26, 0.0  ;;  %1645 = vst.msk [vmem:[#allocation2 + $0x40] sm:$0xff] %vm390_vm2, %v1627_v11  ;;  %v2502_v27 = vld.sshfl [vmem:[#allocation1] sm:$0xff pattern:$0x73625140]  ;;  %v2039_v24 = vadd.f32 %v1992_v31, %v1947_v57  ;;  %v1421_v40 = vadd.f32 %v1378_v25, %v1329_v44  ;;  %v1790_v44 = vrot.slane %v3967_v35, 1 }
 0x1b1   : > { %2501 = vst [vmem:[#allocation1 + $0x23] ss:$4 sm:$0xff] %v2364_v6  ;;  %v2074_v2 = vld [vmem:[#allocation2 + $0x28] sm:$0xff] }
 0x1b2   : > { %2504 = vst [vmem:[#allocation1] ss:$4 sm:$0xff] %v2365_v22  ;;  %v2119_v29 = vrot.slane %v2074_v2, 2  ;;  %v2120_v63 = vrot.slane %v2074_v2, 4  ;;  %v2121_v62 = vrot.slane %v2074_v2, 6  ;;  %v2229_v16 = vmul.f32 %v3790_v7, %v2074_v2  ;;  %v3972_v10 = vpop.f32.mrf.mxu2 }
 0x1b3   : > { %2505 = vst [vmem:[#allocation1 + $0x1] ss:$4 sm:$0xff] %v2366_v21 }
 0x1b4   : > { %v2230_v42 = vmul.f32 %v3793_v46, %v2119_v29  ;;  %v2231_v0 = vmul.f32 %v3772_v41, %v2120_v63  ;;  %v2232_v19 = vmul.f32 %v3786_v37, %v2121_v62  ;;  %v2303_v15 = vadd.f32 %v3800_v51, %v2229_v16  ;;  %1851 = vst.msk [vmem:[#allocation2 + $0x38] sm:$0xff] %vm390_vm2, %v1833_v3  ;;  %v1298_v39 = vpop.f32.mrf.mxu1 }
 0x1b5   : > { %2057 = vst.msk [vmem:[#allocation2 + $0x30] sm:$0xff] %vm390_vm2, %v2039_v24  ;;  %v1379_v32 = vrot.slane %v1298_v39, 2  ;;  %v1610_v54 = vld [vmem:[#allocation2 + $0x48] sm:$0xff]  ;;  %v1995_v3 = vrot.slane %v3969_v9, 2 }
 0x1b6   : > { %v2304_v33 = vadd.f32 %v3803_v13, %v2230_v42  ;;  %v2305_v5 = vadd.f32 %v3778_v43, %v2231_v0  ;;  %v2306_v17 = vadd.f32 %v3796_v8, %v2232_v19  ;;  %v2367_v38 = vmax.f32 %v2303_v15, 0.0  ;;  %2582 = vst.msk [vmem:[%s3888_s12 + $0x10] sm:$0xff] %vm390_vm2, %v2502_v27 }
 0x1b7   : > { %v1742_v4 = vld [vmem:[#allocation2 + $0x40] sm:$0xff]  ;;  %1439 = vst.msk [vmem:[#allocation2 + $0x50] sm:$0xff] %vm390_vm2, %v1421_v40  ;;  %v1380_v23 = vsel %vm733_vm4, %v1377_v55, %v1379_v32  ;;  %v1628_v6 = vadd.f32 %v1610_v54, %v3917_v50  ;;  %v1996_v42 = vsel %vm733_vm4, %v1993_v48, %v1995_v3  ;;  %v4029_v19 = vpop.f32.mrf.mxu3  ;;  %v1791_v48 = vsel %vm525_vm3, %v1788_v56, %v1790_v44 }
 0x1b8   : > { %v2368_v36 = vmax.f32 %v2304_v33, 0.0  ;;  %v2369_v49 = vmax.f32 %v2305_v5, 0.0  ;;  %v2370_v52 = vmax.f32 %v2306_v17, 0.0  ;;  %2506 = vst [vmem:[#allocation1 + $0x2] ss:$4 sm:$0xff] %v2367_v38  ;;  %v1834_v60 = vadd.f32 %v1789_v53, %v1742_v4  ;;  %v4034_v38 = vpop.f32.mrf.mxu0 }
 0x1b9   : > { %v2503_v28 = vld.sshfl [vmem:[#allocation1 + $0x20] sm:$0xff pattern:$0x73625140]  ;;  %v1422_v55 = vadd.f32 %v1380_v23, %v1330_v1  ;;  %1646 = vst.msk [vmem:[#allocation2 + $0x48] sm:$0xff] %vm390_vm2, %v1628_v6  ;;  %v1792_v23 = vrot.slane %v3992_v58, 1  ;;  %v1999_v9 = vrot.slane %v4034_v38, 2 }
 0x1ba   : > { %2507 = vst [vmem:[#allocation1 + $0x3] ss:$4 sm:$0xff] %v2368_v36  ;;  %v4002_v11 = vpop.f32.mrf.mxu2 }
 0x1bb   : > { %2508 = vst [vmem:[#allocation1 + $0x20] ss:$4 sm:$0xff] %v2369_v49  ;;  %v1948_v45 = vld [vmem:[#allocation2 + $0x38] sm:$0xff] }
 0x1bc   : > { %2509 = vst [vmem:[#allocation1 + $0x21] ss:$4 sm:$0xff] %v2370_v52  ;;  %v2075_v47 = vld [vmem:[#allocation2 + $0x30] sm:$0xff]  ;;  %v2040_v26 = vadd.f32 %v1994_v18, %v1948_v45  ;;  %v4000_v61 = vpop.f32.mrf.mxu1 }
 0x1bd   : > { %v2122_v14 = vrot.slane %v2075_v47, 2  ;;  %v2123_v57 = vrot.slane %v2075_v47, 6  ;;  %v2233_v20 = vmul.f32 %v3790_v7, %v2075_v47  ;;  %1852 = vst.msk [vmem:[#allocation2 + $0x40] sm:$0xff] %vm390_vm2, %v1834_v60  ;;  %v1381_v59 = vrot.slane %v4000_v61, 2 }
 0x1be   : > { %2058 = vst.msk [vmem:[#allocation2 + $0x38] sm:$0xff] %vm390_vm2, %v2040_v26  ;;  %v1611_v31 = vld [vmem:[#allocation2 + $0x50] sm:$0xff] }
 0x1bf   : > { %v2234_v22 = vmul.f32 %v3793_v46, %v2122_v14  ;;  %v2235_v50 = vmul.f32 %v3772_v41, %v2123_v57  ;;  %v2307_v21 = vadd.f32 %v3800_v51, %v2233_v20  ;;  %2583 = vst.msk [vmem:[%s3888_s12 + $0x18] sm:$0xff] %vm390_vm2, %v2503_v28  ;;  %v1629_v25 = vadd.f32 %v1611_v31, %v3944_v30  ;;  %v1331_v30 = vld [vmem:[#allocation2 + $0x60] sm:$0xff] }
 0x1c0   : > { %1440 = vst.msk [vmem:[#allocation2 + $0x58] sm:$0xff] %vm390_vm2, %v1422_v55  ;;  %v1382_v63 = vsel %vm733_vm4, %v1379_v32, %v1381_v59  ;;  %v1743_v36 = vld [vmem:[#allocation2 + $0x48] sm:$0xff]  ;;  %v1793_v20 = vsel %vm525_vm3, %v1790_v44, %v1792_v23 }
 0x1c1   : > { %v2512_v27 = vld.sshfl [vmem:[#allocation1] sm:$0xff pattern:$0x73625140]  ;;  %v2308_v2 = vadd.f32 %v3803_v13, %v2234_v22  ;;  %v2309_v24 = vadd.f32 %v3778_v43, %v2235_v50  ;;  %v2371_v29 = vmax.f32 %v2307_v21, 0.0  ;;  %1647 = vst.msk [vmem:[#allocation2 + $0x50] sm:$0xff] %vm390_vm2, %v1629_v25  ;;  %v1423_v0 = vadd.f32 %v1382_v63, %v1331_v30  ;;  %v4060_v25 = vpop.f32.mrf.mxu3  ;;  %v1332_v63 = vld [vmem:[#allocation2 + $0x68] sm:$0xff] }
 0x1c2   : > { %2584 = vst.msk [vmem:[%s3888_s12 + $0x20] sm:$0xff] %vm390_vm2, %v2512_v27  ;;  %v4036_v4 = vpop.f32.mrf.mxu2  ;;  %v1835_v54 = vadd.f32 %v1791_v48, %v1743_v36  ;;  %v1997_v21 = vrot.slane %v3997_v34, 2  ;;  %v1794_v36 = vrot.slane %v4029_v19, 1 }
 0x1c3   : > { %v2372_v62 = vmax.f32 %v2308_v2, 0.0  ;;  %v2373_v16 = vmax.f32 %v2309_v24, 0.0  ;;  %2510 = vst [vmem:[#allocation1 + $0x22] ss:$4 sm:$0xff] %v2371_v29 }
 0x1c4   : > { %v1949_v40 = vld [vmem:[#allocation2 + $0x40] sm:$0xff]  ;;  %v4031_v15 = vpop.f32.mrf.mxu1  ;;  %1441 = vst.msk [vmem:[#allocation2 + $0x60] sm:$0xff] %vm390_vm2, %v1423_v0  ;;  %v2000_v38 = vsel %vm733_vm4, %v1997_v21, %v1999_v9 }
 0x1c5   : > { %2511 = vst [vmem:[#allocation1 + $0x23] ss:$4 sm:$0xff] %v2372_v62  ;;  %v2076_v39 = vld [vmem:[#allocation2 + $0x38] sm:$0xff]  ;;  %v2041_v32 = vadd.f32 %v1996_v42, %v1949_v40  ;;  %v1383_v12 = vrot.slane %v4031_v15, 2  ;;  %v4064_v62 = vpop.f32.mrf.mxu0 }
 0x1c6   : > { %2514 = vst [vmem:[#allocation1] ss:$4 sm:$0xff] %v2373_v16  ;;  %v2124_v33 = vrot.slane %v2076_v39, 2  ;;  %v2125_v5 = vrot.slane %v2076_v39, 4  ;;  %v2126_v35 = vrot.slane %v2076_v39, 6  ;;  %v2236_v17 = vmul.f32 %v3786_v37, %v2076_v39 }
 0x1c7   : > { %2059 = vst.msk [vmem:[#allocation2 + $0x40] sm:$0xff] %vm390_vm2, %v2041_v32  ;;  %v1612_v55 = vld [vmem:[#allocation2 + $0x58] sm:$0xff]  ;;  %v1384_v31 = vsel %vm733_vm4, %v1381_v59, %v1383_v12 }
 0x1c8   : > { %v2237_v49 = vmul.f32 %v3790_v7, %v2124_v33  ;;  %v2238_v52 = vmul.f32 %v3793_v46, %v2125_v5  ;;  %v2239_v53 = vmul.f32 %v3772_v41, %v2126_v35  ;;  %v2310_v60 = vadd.f32 %v3796_v8, %v2236_v17  ;;  %1853 = vst.msk [vmem:[#allocation2 + $0x48] sm:$0xff] %vm390_vm2, %v1835_v54  ;;  %v1744_v1 = vld [vmem:[#allocation2 + $0x50] sm:$0xff] }
 0x1c9   : > { %v1836_v50 = vadd.f32 %v1793_v20, %v1744_v1  ;;  %v1630_v29 = vadd.f32 %v1612_v55, %v3972_v10  ;;  %v1424_v61 = vadd.f32 %v1384_v31, %v1332_v63  ;;  %v1998_v10 = vsel %vm733_vm4, %v1995_v3, %v1997_v21 }
 0x1ca   : > { %v2311_v56 = vadd.f32 %v3800_v51, %v2237_v49  ;;  %v2312_v28 = vadd.f32 %v3803_v13, %v2238_v52  ;;  %v2313_v45 = vadd.f32 %v3778_v43, %v2239_v53  ;;  %v2374_v18 = vmax.f32 %v2310_v60, 0.0  ;;  %v4066_v16 = vpop.f32.mrf.mxu2  ;;  %v1333_v52 = vld [vmem:[#allocation2 + $0x70] sm:$0xff]  ;;  %v4088_v60 = vpop.f32.mrf.mxu3 }
 0x1cb   : > { %1854 = vst.msk [vmem:[#allocation2 + $0x50] sm:$0xff] %vm390_vm2, %v1836_v50  ;;  %v1613_v32 = vld [vmem:[#allocation2 + $0x60] sm:$0xff]  ;;  %v1796_v55 = vrot.slane %v4060_v25, 1  ;;  %v2001_v50 = vrot.slane %v4064_v62, 2 }
 0x1cc   : > { %v2375_v47 = vmax.f32 %v2311_v56, 0.0  ;;  %v2376_v26 = vmax.f32 %v2312_v28, 0.0  ;;  %v2377_v6 = vmax.f32 %v2313_v45, 0.0  ;;  %v1307_v14 = vpop.f32.mrf.mxu1  ;;  %v2513_v57 = vld.sshfl [vmem:[#allocation1 + $0x20] sm:$0xff pattern:$0x73625140]  ;;  %v1631_v49 = vadd.f32 %v1613_v32, %v4002_v11 }
 0x1cd   : > { %2515 = vst [vmem:[#allocation1 + $0x1] ss:$4 sm:$0xff] %v2374_v18  ;;  %v1385_v59 = vrot.slane %v1307_v14, 2  ;;  %v1795_v56 = vsel %vm525_vm3, %v1792_v23, %v1794_v36  ;;  %v4096_v11 = vpop.f32.mrf.mxu0  ;;  %v1334_v45 = vld [vmem:[#allocation2 + $0x78] sm:$0xff]  ;;  %v1797_v63 = vsel %vm525_vm3, %v1794_v36, %v1796_v55 }
 0x1ce   : > { %2516 = vst [vmem:[#allocation1 + $0x2] ss:$4 sm:$0xff] %v2375_v47  ;;  %v2077_v22 = vld [vmem:[#allocation2 + $0x40] sm:$0xff] }
 0x1cf   : > { %2517 = vst [vmem:[#allocation1 + $0x3] ss:$4 sm:$0xff] %v2376_v26  ;;  %v2127_v27 = vrot.slane %v2077_v22, 2  ;;  %v2128_v2 = vrot.slane %v2077_v22, 4  ;;  %v2240_v24 = vmul.f32 %v3786_v37, %v2077_v22  ;;  %v1950_v40 = vld [vmem:[#allocation2 + $0x48] sm:$0xff]  ;;  %v1386_v33 = vsel %vm733_vm4, %v1383_v12, %v1385_v59 }
 0x1d0   : > { %2518 = vst [vmem:[#allocation1 + $0x20] ss:$4 sm:$0xff] %v2377_v6  ;;  %v2042_v39 = vadd.f32 %v1998_v10, %v1950_v40  ;;  %v1425_v53 = vadd.f32 %v1386_v33, %v1333_v52 }
 0x1d1   : > { %2585 = vst.msk [vmem:[%s3888_s12 + $0x28] sm:$0xff] %vm390_vm2, %v2513_v57  ;;  %v2241_v34 = vmul.f32 %v3790_v7, %v2127_v27  ;;  %v2242_v44 = vmul.f32 %v3793_v46, %v2128_v2  ;;  %v2314_v30 = vadd.f32 %v3796_v8, %v2240_v24 }
 0x1d2   : > { %1648 = vst.msk [vmem:[#allocation2 + $0x58] sm:$0xff] %vm390_vm2, %v1630_v29  ;;  %v1951_v12 = vld [vmem:[#allocation2 + $0x50] sm:$0xff]  ;;  %v4098_v18 = vpop.f32.mrf.mxu2  ;;  %v1335_v29 = vld [vmem:[#allocation2 + $0x80] sm:$0xff] }
 0x1d3   : > { %v2315_v42 = vadd.f32 %v3800_v51, %v2241_v34  ;;  %v2316_v0 = vadd.f32 %v3803_v13, %v2242_v44  ;;  %v2378_v15 = vmax.f32 %v2314_v30, 0.0  ;;  %1442 = vst.msk [vmem:[#allocation2 + $0x68] sm:$0xff] %vm390_vm2, %v1424_v61  ;;  %v2043_v28 = vadd.f32 %v2000_v38, %v1951_v12 }
 0x1d4   : > { %v1310_v5 = vpop.f32.mrf.mxu1  ;;  %2060 = vst.msk [vmem:[#allocation2 + $0x48] sm:$0xff] %vm390_vm2, %v2042_v39  ;;  %v2002_v39 = vsel %vm733_vm4, %v1999_v9, %v2001_v50 }
 0x1d5   : > { %v2379_v35 = vmax.f32 %v2315_v42, 0.0  ;;  %v2380_v17 = vmax.f32 %v2316_v0, 0.0  ;;  %2519 = vst [vmem:[#allocation1 + $0x21] ss:$4 sm:$0xff] %v2378_v15  ;;  %v1387_v3 = vrot.slane %v1310_v5, 2  ;;  %v4126_v42 = vpop.f32.mrf.mxu3 }
 0x1d6   : > { %v2522_v48 = vld.sshfl [vmem:[#allocation1] sm:$0xff pattern:$0x73625140]  ;;  %1649 = vst.msk [vmem:[#allocation2 + $0x60] sm:$0xff] %vm390_vm2, %v1631_v49 }
 0x1d7   : > { %2586 = vst.msk [vmem:[%s3888_s12 + $0x30] sm:$0xff] %vm390_vm2, %v2522_v48  ;;  %v1388_v54 = vsel %vm733_vm4, %v1385_v59, %v1387_v3  ;;  %v1798_v59 = vrot.slane %v4088_v60, 1 }
 0x1d8   : > { %2520 = vst [vmem:[#allocation1 + $0x22] ss:$4 sm:$0xff] %v2379_v35  ;;  %v1426_v26 = vadd.f32 %v1388_v54, %v1334_v45 }
 0x1d9   : > { %2521 = vst [vmem:[#allocation1 + $0x23] ss:$4 sm:$0xff] %v2380_v17  ;;  %v1745_v19 = vld [vmem:[#allocation2 + $0x58] sm:$0xff]  ;;  %v4132_v17 = vpop.f32.mrf.mxu0  ;;  %v1799_v9 = vsel %vm525_vm3, %v1796_v55, %v1798_v59 }
 0x1da   : > { %v1837_v1 = vadd.f32 %v1795_v56, %v1745_v19  ;;  %1443 = vst.msk [vmem:[#allocation2 + $0x70] sm:$0xff] %vm390_vm2, %v1425_v53  ;;  %v1614_v47 = vld [vmem:[#allocation2 + $0x68] sm:$0xff] }
 0x1db   : > { %2061 = vst.msk [vmem:[#allocation2 + $0x50] sm:$0xff] %vm390_vm2, %v2043_v28  ;;  %v1632_v58 = vadd.f32 %v1614_v47, %v4036_v4  ;;  %v2078_v23 = vld [vmem:[#allocation2 + $0x48] sm:$0xff] }
 0x1dc   : > { %v4103_v6 = vpop.f32.mrf.mxu1  ;;  %1855 = vst.msk [vmem:[#allocation2 + $0x58] sm:$0xff] %vm390_vm2, %v1837_v1  ;;  %v2129_v57 = vrot.slane %v2078_v23, 2  ;;  %v2130_v20 = vrot.slane %v2078_v23, 4  ;;  %v2131_v31 = vrot.slane %v2078_v23, 6  ;;  %v2243_v22 = vmul.f32 %v3772_v41, %v2078_v23 }
 0x1dd   : > { %v1389_v14 = vrot.slane %v4103_v6, 2  ;;  %1650 = vst.msk [vmem:[#allocation2 + $0x68] sm:$0xff] %vm390_vm2, %v1632_v58  ;;  %v1746_v61 = vld [vmem:[#allocation2 + $0x60] sm:$0xff]  ;;  %v2003_v1 = vrot.slane %v4096_v11, 2 }
 0x1de   : > { %1444 = vst.msk [vmem:[#allocation2 + $0x78] sm:$0xff] %vm390_vm2, %v1426_v26  ;;  %v2244_v25 = vmul.f32 %v3786_v37, %v2129_v57  ;;  %v2245_v27 = vmul.f32 %v3790_v7, %v2130_v20  ;;  %v2246_v2 = vmul.f32 %v3793_v46, %v2131_v31  ;;  %v2317_v24 = vadd.f32 %v3778_v43, %v2243_v22 }
 0x1df   : > { %v1390_v4 = vsel %vm733_vm4, %v1387_v3, %v1389_v14  ;;  %v1838_v15 = vadd.f32 %v1797_v63, %v1746_v61  ;;  %v1593_v3 = vpop.f32.mrf.mxu2  ;;  %v2004_v11 = vsel %vm733_vm4, %v2001_v50, %v2003_v1  ;;  %v1336_v50 = vld [vmem:[#allocation2 + $0x88] sm:$0xff] }
 0x1e0   : > { %v2523_v21 = vld.sshfl [vmem:[#allocation1 + $0x20] sm:$0xff pattern:$0x73625140]  ;;  %v1427_v34 = vadd.f32 %v1390_v4, %v1335_v29  ;;  %v2318_v44 = vadd.f32 %v3796_v8, %v2244_v25  ;;  %v2319_v30 = vadd.f32 %v3800_v51, %v2245_v27  ;;  %v2320_v40 = vadd.f32 %v3803_v13, %v2246_v2 }
 0x1e1   : > { %2587 = vst.msk [vmem:[%s3888_s12 + $0x38] sm:$0xff] %vm390_vm2, %v2523_v21  ;;  %v2381_v10 = vmax.f32 %v2317_v24, 0.0  ;;  %v1615_v57 = vld [vmem:[#allocation2 + $0x70] sm:$0xff]  ;;  %v2005_v4 = vrot.slane %v4132_v17, 2  ;;  %v4153_v21 = vpop.f32.mrf.mxu3  ;;  %v4162_v29 = vpop.f32.mrf.mxu0 }
 0x1e2   : > { %v2079_v0 = vld [vmem:[#allocation2 + $0x50] sm:$0xff]  ;;  %1445 = vst.msk [vmem:[#allocation2 + $0x80] sm:$0xff] %vm390_vm2, %v1427_v34  ;;  %v2382_v32 = vmax.f32 %v2318_v44, 0.0  ;;  %v2383_v33 = vmax.f32 %v2319_v30, 0.0  ;;  %v2384_v5 = vmax.f32 %v2320_v40, 0.0  ;;  %v1633_v24 = vadd.f32 %v1615_v57, %v4066_v16 }
 0x1e3   : > { %2524 = vst [vmem:[#allocation1] ss:$4 sm:$0xff] %v2381_v10  ;;  %v2132_v35 = vrot.slane %v2079_v0, 2  ;;  %v2133_v48 = vrot.slane %v2079_v0, 4  ;;  %v2134_v36 = vrot.slane %v2079_v0, 6  ;;  %v2247_v49 = vmul.f32 %v3772_v41, %v2079_v0  ;;  %v1952_v52 = vld [vmem:[#allocation2 + $0x58] sm:$0xff] }
 0x1e4   : > { %1856 = vst.msk [vmem:[#allocation2 + $0x60] sm:$0xff] %vm390_vm2, %v1838_v15  ;;  %v1747_v53 = vld [vmem:[#allocation2 + $0x68] sm:$0xff]  ;;  %v1316_v54 = vpop.f32.mrf.mxu1  ;;  %v2044_v38 = vadd.f32 %v2002_v39, %v1952_v52  ;;  %v4175_v0 = vld [vmem:[%s4302_s2] ss:$0 sm:$0xff]  ;;  %v1802_v52 = vrot.slane %v4153_v21, 1 }
 0x1e5   : > { %2525 = vst [vmem:[#allocation1 + $0x1] ss:$4 sm:$0xff] %v2382_v32  ;;  %v2248_v12 = vmul.f32 %v3786_v37, %v2132_v35  ;;  %v1839_v56 = vadd.f32 %v1799_v9, %v1747_v53  ;;  %v2249_v19 = vmul.f32 %v3790_v7, %v2133_v48  ;;  %v2250_v28 = vmul.f32 %v3793_v46, %v2134_v36 }
 0x1e6   : > { %2526 = vst [vmem:[#allocation1 + $0x2] ss:$4 sm:$0xff] %v2383_v33  ;;  %v2321_v41 = vadd.f32 %v3778_v43, %v2247_v49  ;;  %v1391_v47 = vrot.slane %v1316_v54, 2  ;;  %v1616_v43 = vld [vmem:[#allocation2 + $0x78] sm:$0xff]  ;;  %v1800_v33 = vrot.slane %v4126_v42, 1 }
 0x1e7   : > { %2527 = vst [vmem:[#allocation1 + $0x3] ss:$4 sm:$0xff] %v2384_v5  ;;  %v2322_v45 = vadd.f32 %v3796_v8, %v2248_v12  ;;  %v2323_v26 = vadd.f32 %v3800_v51, %v2249_v19  ;;  %v2324_v58 = vadd.f32 %v3803_v13, %v2250_v28  ;;  %v4158_v27 = vpop.f32.mrf.mxu2  ;;  %v1634_v62 = vadd.f32 %v1616_v43, %v4098_v18 }
 0x1e8   : > { %v2385_v23 = vmax.f32 %v2321_v41, 0.0  ;;  %2062 = vst.msk [vmem:[#allocation2 + $0x58] sm:$0xff] %vm390_vm2, %v2044_v38  ;;  %v1392_v25 = vsel %vm733_vm4, %v1389_v14, %v1391_v47  ;;  %v2006_v14 = vsel %vm733_vm4, %v2003_v1, %v2005_v4  ;;  %v1801_v41 = vsel %vm525_vm3, %v1798_v59, %v1800_v33 }
 0x1e9   : > { %v2386_v55 = vmax.f32 %v2322_v45, 0.0  ;;  %1857 = vst.msk [vmem:[#allocation2 + $0x68] sm:$0xff] %vm390_vm2, %v1839_v56  ;;  %v2387_v20 = vmax.f32 %v2323_v26, 0.0  ;;  %v2388_v31 = vmax.f32 %v2324_v58, 0.0  ;;  %v1617_v63 = vld [vmem:[#allocation2 + $0x80] sm:$0xff]  ;;  %v1428_v34 = vadd.f32 %v1392_v25, %v1336_v50  ;;  %v4195_v9 = vpop.f32.mrf.mxu3  ;;  %v4201_v1 = vpop.f32.mrf.mxu0 }
 0x1ea   : > { %2528 = vst [vmem:[#allocation1 + $0x20] ss:$4 sm:$0xff] %v2385_v23  ;;  %v1635_v40 = vadd.f32 %v1617_v63, %v1593_v3  ;;  %v4186_v3 = vld [vmem:[%s4303_s3] ss:$0 sm:$0xff]  ;;  %v1803_v58 = vsel %vm525_vm3, %v1800_v33, %v1802_v52 }
 0x1eb   : > { %2529 = vst [vmem:[#allocation1 + $0x21] ss:$4 sm:$0xff] %v2386_v55  ;;  %v1953_v22 = vld [vmem:[#allocation2 + $0x60] sm:$0xff]  ;;  %v1804_v55 = vrot.slane %v4195_v9, 1 }
 0x1ec   : > { %2530 = vst [vmem:[#allocation1 + $0x22] ss:$4 sm:$0xff] %v2387_v20  ;;  %v2045_v2 = vadd.f32 %v2004_v11, %v1953_v22 }
 0x1ed   : > { %2531 = vst [vmem:[#allocation1 + $0x23] ss:$4 sm:$0xff] %v2388_v31  ;;  %v1805_v63 = vsel %vm525_vm3, %v1802_v52, %v1804_v55 }
 0x1ee   : > { %v2532_v61 = vld.sshfl [vmem:[#allocation1] sm:$0xff pattern:$0x73625140]  ;;  %2063 = vst.msk [vmem:[#allocation2 + $0x60] sm:$0xff] %vm390_vm2, %v2045_v2 }
 0x1ef   : > { %2588 = vst.msk [vmem:[%s3888_s12 + $0x40] sm:$0xff] %vm390_vm2, %v2532_v61  ;;  %v2080_v6 = vld [vmem:[#allocation2 + $0x58] sm:$0xff]  ;;  %v1599_v5 = vpop.f32.mrf.mxu2 }
 0x1f0   : > { %v2135_v44 = vrot.slane %v2080_v6, 2  ;;  %v2136_v16 = vrot.slane %v2080_v6, 4  ;;  %v2137_v30 = vrot.slane %v2080_v6, 6  ;;  %1651 = vst.msk [vmem:[#allocation2 + $0x70] sm:$0xff] %vm390_vm2, %v1633_v24  ;;  %v1954_v18 = vld [vmem:[#allocation2 + $0x68] sm:$0xff] }
 0x1f1   : > { %v2046_v10 = vadd.f32 %v2006_v14, %v1954_v18  ;;  %1652 = vst.msk [vmem:[#allocation2 + $0x78] sm:$0xff] %vm390_vm2, %v1634_v62  ;;  %v4227_v5 = vpop.f32.mrf.mxu0 }
 0x1f2   : > { %v2251_v15 = vmul.f32 %v4175_v0, %v2135_v44  ;;  %v2252_v39 = vmul.f32 %v3786_v37, %v2136_v16  ;;  %v2253_v32 = vmul.f32 %v3790_v7, %v2137_v30  ;;  %1446 = vst.msk [vmem:[#allocation2 + $0x88] sm:$0xff] %vm390_vm2, %v1428_v34 }
 0x1f3   : > { %2064 = vst.msk [vmem:[#allocation2 + $0x68] sm:$0xff] %vm390_vm2, %v2046_v10 }
 0x1f4   : > { %v2533_v35 = vld.sshfl [vmem:[#allocation1 + $0x20] sm:$0xff pattern:$0x73625140]  ;;  %v2325_v48 = vadd.f32 %v4186_v3, %v2251_v15  ;;  %v2326_v36 = vadd.f32 %v3796_v8, %v2252_v39  ;;  %v2327_v49 = vadd.f32 %v3800_v51, %v2253_v32  ;;  %1653 = vst.msk [vmem:[#allocation2 + $0x80] sm:$0xff] %vm390_vm2, %v1635_v40  ;;  %v2007_v40 = vrot.slane %v4162_v29, 2 }
 0x1f5   : > { %2589 = vst.msk [vmem:[%s3888_s12 + $0x48] sm:$0xff] %vm390_vm2, %v2533_v35  ;;  %v2081_v42 = vld [vmem:[#allocation2 + $0x60] sm:$0xff]  ;;  %v2009_v32 = vrot.slane %v4201_v1, 2 }
 0x1f6   : > { %v2389_v53 = vmax.f32 %v2325_v48, 0.0  ;;  %v2390_v54 = vmax.f32 %v2326_v36, 0.0  ;;  %v2391_v12 = vmax.f32 %v2327_v49, 0.0  ;;  %v2138_v38 = vrot.slane %v2081_v42, 2  ;;  %v1731_v36 = vpop.f32.mrf.mxu3 }
 0x1f7   : > { %v2139_v56 = vrot.slane %v2081_v42, 4  ;;  %v2140_v19 = vrot.slane %v2081_v42, 6  ;;  %v2254_v28 = vmul.f32 %v3793_v46, %v2081_v42  ;;  %v1748_v45 = vld [vmem:[#allocation2 + $0x70] sm:$0xff]  ;;  %v2008_v29 = vsel %vm733_vm4, %v2005_v4, %v2007_v40 }
 0x1f8   : > { %2534 = vst [vmem:[#allocation1] ss:$4 sm:$0xff] %v2389_v53  ;;  %v2255_v47 = vmul.f32 %v4175_v0, %v2138_v38  ;;  %v1840_v26 = vadd.f32 %v1801_v41, %v1748_v45  ;;  %v1749_v23 = vld [vmem:[#allocation2 + $0x78] sm:$0xff]  ;;  %v2010_v42 = vsel %vm733_vm4, %v2007_v40, %v2009_v32  ;;  %v2011_v53 = vrot.slane %v4227_v5, 2 }
 0x1f9   : > { %2535 = vst [vmem:[#allocation1 + $0x1] ss:$4 sm:$0xff] %v2390_v54  ;;  %v2256_v57 = vmul.f32 %v3786_v37, %v2139_v56  ;;  %v2257_v20 = vmul.f32 %v3790_v7, %v2140_v19  ;;  %v2328_v60 = vadd.f32 %v3803_v13, %v2254_v28  ;;  %v1841_v59 = vadd.f32 %v1803_v58, %v1749_v23  ;;  %v1618_v61 = vld [vmem:[#allocation2 + $0x88] sm:$0xff]  ;;  %v1938_v45 = vpop.f32.mrf.mxu0 }
 0x1fa   : > { %2536 = vst [vmem:[#allocation1 + $0x2] ss:$4 sm:$0xff] %v2391_v12  ;;  %v2329_v31 = vadd.f32 %v4186_v3, %v2255_v47  ;;  %v2082_v43 = vld [vmem:[#allocation2 + $0x68] sm:$0xff]  ;;  %v1636_v10 = vadd.f32 %v1618_v61, %v4158_v27  ;;  %v1806_v12 = vrot.slane %v1731_v36, 1  ;;  %v2012_v4 = vsel %vm733_vm4, %v2009_v32, %v2011_v53 }
 0x1fb   : > { %v2330_v22 = vadd.f32 %v3796_v8, %v2256_v57  ;;  %v2331_v11 = vadd.f32 %v3800_v51, %v2257_v20  ;;  %v2392_v21 = vmax.f32 %v2328_v60, 0.0  ;;  %1858 = vst.msk [vmem:[#allocation2 + $0x70] sm:$0xff] %vm390_vm2, %v1840_v26  ;;  %v2141_v25 = vrot.slane %v2082_v43, 4  ;;  %v1750_v2 = vld [vmem:[#allocation2 + $0x80] sm:$0xff] }
 0x1fc   : > { %v2393_v24 = vmax.f32 %v2329_v31, 0.0  ;;  %v2142_v62 = vrot.slane %v2082_v43, 6  ;;  %v2258_v50 = vmul.f32 %v3793_v46, %v2082_v43  ;;  %1859 = vst.msk [vmem:[#allocation2 + $0x78] sm:$0xff] %vm390_vm2, %v1841_v59  ;;  %v1842_v44 = vadd.f32 %v1805_v63, %v1750_v2 }
 0x1fd   : > { %v2394_v34 = vmax.f32 %v2330_v22, 0.0  ;;  %v2395_v6 = vmax.f32 %v2331_v11, 0.0  ;;  %2537 = vst [vmem:[#allocation1 + $0x3] ss:$4 sm:$0xff] %v2392_v21  ;;  %v2259_v14 = vmul.f32 %v4175_v0, %v2141_v25  ;;  %v1807_v19 = vsel %vm525_vm3, %v1804_v55, %v1806_v12 }
 0x1fe   : > { %2538 = vst [vmem:[#allocation1 + $0x20] ss:$4 sm:$0xff] %v2393_v24  ;;  %v2260_v16 = vmul.f32 %v3786_v37, %v2142_v62  ;;  %v2332_v30 = vadd.f32 %v3803_v13, %v2258_v50  ;;  %v2013_v59 = vrot.slane %v1938_v45, 2 }
 0x1ff   : > { %2539 = vst [vmem:[#allocation1 + $0x21] ss:$4 sm:$0xff] %v2394_v34  ;;  %v2333_v18 = vadd.f32 %v4186_v3, %v2259_v14 }
 0x200   : > { %2540 = vst [vmem:[#allocation1 + $0x22] ss:$4 sm:$0xff] %v2395_v6  ;;  %v2334_v15 = vadd.f32 %v3796_v8, %v2260_v16  ;;  %v2396_v39 = vmax.f32 %v2332_v30, 0.0 }
 0x201   : > { %v2397_v33 = vmax.f32 %v2333_v18, 0.0  ;;  %1860 = vst.msk [vmem:[#allocation2 + $0x80] sm:$0xff] %vm390_vm2, %v1842_v44 }
 0x202   : > { %v2398_v35 = vmax.f32 %v2334_v15, 0.0  ;;  %2541 = vst [vmem:[#allocation1 + $0x23] ss:$4 sm:$0xff] %v2396_v39  ;;  %v1955_v48 = vld [vmem:[#allocation2 + $0x70] sm:$0xff]  ;;  %v2014_v39 = vsel %vm733_vm4, %v2011_v53, %v2013_v59 }
 0x203   : > { %v1956_v27 = vld [vmem:[#allocation2 + $0x78] sm:$0xff]  ;;  %1654 = vst.msk [vmem:[#allocation2 + $0x88] sm:$0xff] %vm390_vm2, %v1636_v10  ;;  %v2047_v52 = vadd.f32 %v2008_v29, %v1955_v48 }
 0x204   : > { %v2542_v49 = vld.sshfl [vmem:[#allocation1] sm:$0xff pattern:$0x73625140]  ;;  %v2048_v54 = vadd.f32 %v2010_v42, %v1956_v27 }
 0x205   : > { %2544 = vst [vmem:[#allocation1] ss:$4 sm:$0xff] %v2397_v33 }
 0x206   : > { %2545 = vst [vmem:[#allocation1 + $0x1] ss:$4 sm:$0xff] %v2398_v35 }
 0x207   : > { %2590 = vst.msk [vmem:[%s3888_s12 + $0x50] sm:$0xff] %vm390_vm2, %v2542_v49 }
 0x208   : > { %2065 = vst.msk [vmem:[#allocation2 + $0x70] sm:$0xff] %vm390_vm2, %v2047_v52  ;;  %v1957_v17 = vld [vmem:[#allocation2 + $0x80] sm:$0xff] }
 0x209   : > { %v2543_v38 = vld.sshfl [vmem:[#allocation1 + $0x20] sm:$0xff pattern:$0x73625140]  ;;  %2066 = vst.msk [vmem:[#allocation2 + $0x78] sm:$0xff] %vm390_vm2, %v2048_v54  ;;  %v2049_v56 = vadd.f32 %v2012_v4, %v1957_v17 }
 0x20a   : > { %2591 = vst.msk [vmem:[%s3888_s12 + $0x58] sm:$0xff] %vm390_vm2, %v2543_v38  ;;  %v1751_v28 = vld [vmem:[#allocation2 + $0x88] sm:$0xff] }
 0x20b   : > { %v1843_v41 = vadd.f32 %v1807_v19, %v1751_v28  ;;  %2067 = vst.msk [vmem:[#allocation2 + $0x80] sm:$0xff] %vm390_vm2, %v2049_v56 }
 0x20d   : > { %1861 = vst.msk [vmem:[#allocation2 + $0x88] sm:$0xff] %vm390_vm2, %v1843_v41 }
 0x20f   : > { %v2083_v1 = vld [vmem:[#allocation2 + $0x70] sm:$0xff] }
 0x210   : > { %v2143_v47 = vrot.slane %v2083_v1, 2  ;;  %v2144_v26 = vrot.slane %v2083_v1, 4  ;;  %v2145_v58 = vrot.slane %v2083_v1, 6  ;;  %v2261_v23 = vmul.f32 %v3790_v7, %v2083_v1  ;;  %v2084_v57 = vld [vmem:[#allocation2 + $0x78] sm:$0xff] }
 0x211   : > { %v2146_v20 = vrot.slane %v2084_v57, 2  ;;  %v2147_v60 = vrot.slane %v2084_v57, 6  ;;  %v2265_v9 = vmul.f32 %v3790_v7, %v2084_v57 }
 0x212   : > { %v2262_v55 = vmul.f32 %v3793_v46, %v2143_v47  ;;  %v2263_v31 = vmul.f32 %v4175_v0, %v2144_v26  ;;  %v2264_v43 = vmul.f32 %v3786_v37, %v2145_v58  ;;  %v2335_v22 = vadd.f32 %v3800_v51, %v2261_v23  ;;  %v2085_v11 = vld [vmem:[#allocation2 + $0x80] sm:$0xff] }
 0x213   : > { %v2266_v21 = vmul.f32 %v3793_v46, %v2146_v20  ;;  %v2267_v25 = vmul.f32 %v4175_v0, %v2147_v60  ;;  %v2339_v2 = vadd.f32 %v3800_v51, %v2265_v9  ;;  %v2148_v24 = vrot.slane %v2085_v11, 2 }
 0x214   : > { %v2336_v62 = vadd.f32 %v3803_v13, %v2262_v55  ;;  %v2337_v50 = vadd.f32 %v4186_v3, %v2263_v31  ;;  %v2338_v63 = vadd.f32 %v3796_v8, %v2264_v43  ;;  %v2399_v61 = vmax.f32 %v2335_v22, 0.0  ;;  %v1958_v44 = vld [vmem:[#allocation2 + $0x88] sm:$0xff] }
 0x215   : > { %v2340_v34 = vadd.f32 %v3803_v13, %v2266_v21  ;;  %v2403_v6 = vmax.f32 %v2339_v2, 0.0  ;;  %v2149_v14 = vrot.slane %v2085_v11, 4  ;;  %v2150_v40 = vrot.slane %v2085_v11, 6 }
 0x216   : > { %v2400_v16 = vmax.f32 %v2336_v62, 0.0  ;;  %v2401_v30 = vmax.f32 %v2337_v50, 0.0  ;;  %v2402_v18 = vmax.f32 %v2338_v63, 0.0  ;;  %2546 = vst [vmem:[#allocation1 + $0x2] ss:$4 sm:$0xff] %v2399_v61  ;;  %v2268_v15 = vmul.f32 %v3786_v37, %v2085_v11 }
 0x217   : > { %v2404_v10 = vmax.f32 %v2340_v34, 0.0  ;;  %2550 = vst [vmem:[#allocation1 + $0x22] ss:$4 sm:$0xff] %v2403_v6  ;;  %v2341_v32 = vadd.f32 %v4186_v3, %v2267_v25  ;;  %v2269_v33 = vmul.f32 %v3790_v7, %v2148_v24  ;;  %v2050_v5 = vadd.f32 %v2014_v39, %v1958_v44 }
 0x218   : > { %2547 = vst [vmem:[#allocation1 + $0x3] ss:$4 sm:$0xff] %v2400_v16  ;;  %v2270_v35 = vmul.f32 %v3793_v46, %v2149_v14  ;;  %v2271_v48 = vmul.f32 %v4175_v0, %v2150_v40  ;;  %v2342_v29 = vadd.f32 %v3796_v8, %v2268_v15 }
 0x219   : > { %2548 = vst [vmem:[#allocation1 + $0x20] ss:$4 sm:$0xff] %v2401_v30  ;;  %v2405_v27 = vmax.f32 %v2341_v32, 0.0  ;;  %v2343_v36 = vadd.f32 %v3800_v51, %v2269_v33 }
 0x21a   : > { %2549 = vst [vmem:[#allocation1 + $0x21] ss:$4 sm:$0xff] %v2402_v18  ;;  %v2344_v49 = vadd.f32 %v3803_v13, %v2270_v35  ;;  %v2345_v52 = vadd.f32 %v4186_v3, %v2271_v48  ;;  %v2406_v42 = vmax.f32 %v2342_v29, 0.0 }
 0x21b   : > { %2551 = vst [vmem:[#allocation1 + $0x23] ss:$4 sm:$0xff] %v2404_v10  ;;  %v2407_v54 = vmax.f32 %v2343_v36, 0.0 }
 0x21c   : > { %2068 = vst.msk [vmem:[#allocation2 + $0x88] sm:$0xff] %vm390_vm2, %v2050_v5  ;;  %v2408_v0 = vmax.f32 %v2344_v49, 0.0  ;;  %v2409_v17 = vmax.f32 %v2345_v52, 0.0 }
 0x21f   : > { %v2552_v53 = vld.sshfl [vmem:[#allocation1] sm:$0xff pattern:$0x73625140] }
 0x220   : > { %2554 = vst [vmem:[#allocation1] ss:$4 sm:$0xff] %v2405_v27 }
 0x221   : > { %2592 = vst.msk [vmem:[%s3888_s12 + $0x60] sm:$0xff] %vm390_vm2, %v2552_v53 }
 0x222   : > { %v2553_v12 = vld.sshfl [vmem:[#allocation1 + $0x20] sm:$0xff pattern:$0x73625140]  ;;  %2555 = vst [vmem:[#allocation1 + $0x1] ss:$4 sm:$0xff] %v2406_v42 }
 0x223   : > { %2593 = vst.msk [vmem:[%s3888_s12 + $0x68] sm:$0xff] %vm390_vm2, %v2553_v12  ;;  %v2086_v4 = vld [vmem:[#allocation2 + $0x88] sm:$0xff] }
 0x224   : > { %2556 = vst [vmem:[#allocation1 + $0x2] ss:$4 sm:$0xff] %v2407_v54  ;;  %v2151_v38 = vrot.slane %v2086_v4, 2  ;;  %v2152_v56 = vrot.slane %v2086_v4, 4  ;;  %v2272_v19 = vmul.f32 %v3786_v37, %v2086_v4 }
 0x225   : > { %2557 = vst [vmem:[#allocation1 + $0x3] ss:$4 sm:$0xff] %v2408_v0 }
 0x226   : > { %2558 = vst [vmem:[#allocation1 + $0x20] ss:$4 sm:$0xff] %v2409_v17  ;;  %v2273_v3 = vmul.f32 %v3790_v7, %v2151_v38  ;;  %v2274_v28 = vmul.f32 %v3793_v46, %v2152_v56  ;;  %v2346_v41 = vadd.f32 %v3796_v8, %v2272_v19 }
 0x228   : > { %v2347_v45 = vadd.f32 %v3800_v51, %v2273_v3  ;;  %v2348_v1 = vadd.f32 %v3803_v13, %v2274_v28  ;;  %v2410_v47 = vmax.f32 %v2346_v41, 0.0 }
 0x22a   : > { %v2411_v26 = vmax.f32 %v2347_v45, 0.0  ;;  %v2412_v58 = vmax.f32 %v2348_v1, 0.0  ;;  %2559 = vst [vmem:[#allocation1 + $0x21] ss:$4 sm:$0xff] %v2410_v47 }
 0x22c   : > { %v2562_v23 = vld.sshfl [vmem:[#allocation1] sm:$0xff pattern:$0x73625140]  ;;  %2560 = vst [vmem:[#allocation1 + $0x22] ss:$4 sm:$0xff] %v2411_v26 }
 0x22d   : > { %2594 = vst.msk [vmem:[%s3888_s12 + $0x70] sm:$0xff] %vm390_vm2, %v2562_v23 }
 0x22e   : > { %2561 = vst [vmem:[#allocation1 + $0x23] ss:$4 sm:$0xff] %v2412_v58 }
 0x235   : > { %v2563_v37 = vld.sshfl [vmem:[#allocation1 + $0x20] sm:$0xff pattern:$0x73625140] }
 0x236   : > { %2595 = vst.msk [vmem:[%s3888_s12 + $0x78] sm:$0xff] %vm390_vm2, %v2563_v37 }
 0x237 PF: > { %s14_s19 = sadd.s32 1, %s2975_s19   ;;  %s4306_s15 = smov %s2967_s17 }
 0x238   : > { %p11_p8 = scmp.ge.s32.totalorder %s14_s19, 6   ;;  %s4307_s16 = smov %s2971_s18 }
 0x239   : > { %s4308_s17 = smov %s4311_s20  ;;  %s4309_s18 = smov %s4315_s21 }
 0x23a   :  { %13 = sbr.rel (!%p11_p8) target bundleno = 3 (0x3), region = 81 }

</bundles_post_ra>
